<compile_context>
chip_gen: v7x
topology: tpu7x:2x2x1
jax: 0.10.0
libtpu: 0.0.40
codegen_flags: <defaults>
</compile_context>

<pallas_src>
import functools

import jax
import jax.numpy as jnp
import numpy as np
from jax.experimental import pallas as pl
from jax.experimental.pallas import tpu as pltpu

EPS = 1e-5


def _tap_masks_np(H, W, KH, KW, P):
    """Zero-padding validity masks per conv tap, over the flattened H*W axis."""
    HW = H * W
    rr, cc = np.divmod(np.arange(HW, dtype=np.int64), W)
    m = np.empty((KH * KW, 1, HW), np.float32)
    for kh in range(KH):
        for kw in range(KW):
            dh, dw = kh - P, kw - P
            valid = ((rr + dh >= 0) & (rr + dh < H) &
                     (cc + dw >= 0) & (cc + dw < W))
            m[kh * KW + kw, 0, :] = valid.astype(np.float32)
    return m


def _sameblock_kernel(x_ref, w_ref, b_ref, m_ref, g_ref, bt_ref, o_ref,
                      *, N, Cin, Cout, H, W, KH, KW, P):
    """Fused Conv2d(pad=same) + training-mode BatchNorm2d + ReLU.

    x_ref:  (N*Cin, H*W)          VMEM  whole batch, spatial flattened on lanes
    w_ref:  (KH*KW*Cin, Cout, 1)  VMEM  w_ref[(kh*KW+kw)*Cin+ci, co] = w[co,ci,kh,kw]
    b_ref:  (Cout, 1)             VMEM  conv bias
    m_ref:  (KH*KW, 1, H*W)       VMEM  precomputed 0/1 zero-padding masks
    g_ref:  (Cout, 1)             VMEM  BN gamma
    bt_ref: (Cout, 1)             VMEM  BN beta
    o_ref:  (N, Cout, H*W)        VMEM  output
    """
    HW = H * W
    x = x_ref[...]                                    # (N*Cin, HW), dense slab
    bias_col = b_ref[...]                             # (Cout, 1)
    acc0 = jnp.broadcast_to(bias_col, (Cout, HW))     # hoisted bias init

    # Per-sample conv accumulators, kept live in vregs/VMEM for the whole call.
    ys = [acc0] * N

    for kh in range(KH):                              # static tap loops
        dh = kh - P
        for kw in range(KW):
            dw = kw - P
            t = kh * KW + kw
            delta = dh * W + dw
            # Output position f needs x[f + delta]: circular lane roll of the
            # whole (N*Cin, HW) slab, then the precomputed zero-padding mask
            # kills taps that fall outside the image (0/1 multiplicative mask).
            shifted = x if delta == 0 else pltpu.roll(x, (-delta) % HW, axis=1)
            if dh != 0 or dw != 0:
                shifted = shifted * m_ref[t]          # (1, HW) bcast over rows
            for ci in range(Cin):
                wcol = w_ref[t * Cin + ci]            # (Cout, 1): all co at once
                for n in range(N):
                    r = n * Cin + ci
                    src = shifted[r:r + 1, :]         # (1, HW)
                    ys[n] = ys[n] + wcol * src        # dense (Cout, HW) MAC

    # --- BatchNorm (training-mode, biased variance) + ReLU, all in VMEM ---
    count = jnp.float32(N * HW)
    ytot = ys[0]
    for n in range(1, N):
        ytot = ytot + ys[n]
    mean = jnp.sum(ytot, axis=1, keepdims=True) / count          # (Cout, 1)

    centred = [ys[n] - mean for n in range(N)]                   # centered pass
    sqtot = centred[0] * centred[0]
    for n in range(1, N):
        sqtot = sqtot + centred[n] * centred[n]
    var = jnp.sum(sqtot, axis=1, keepdims=True) / count          # (Cout, 1)

    scale = g_ref[...] * jax.lax.rsqrt(var + EPS)                # (Cout, 1)
    beta = bt_ref[...]                                           # (Cout, 1)
    for n in range(N):
        o_ref[n] = jnp.maximum(centred[n] * scale + beta, 0.0)   # (Cout, HW)


@functools.partial(jax.jit, static_argnames=("padding",))
def sameblock2d_forward(x_nchw, params, padding):
    """x_nchw: (N, Cin, H, W) float32.  Returns (N, Cout, H, W) float32."""
    w, b, gamma, beta = params                        # w: (Cout, Cin, KH, KW)
    N, Cin, H, W = x_nchw.shape
    Cout, _, KH, KW = w.shape
    HW = H * W

    x2 = x_nchw.reshape(N * Cin, HW).astype(jnp.float32)
    # (Cout,Cin,KH,KW) -> (KH,KW,Cin,Cout) -> (KH*KW*Cin, Cout, 1)
    w_cols = jnp.transpose(w.astype(jnp.float32), (2, 3, 1, 0)).reshape(
        KH * KW * Cin, Cout, 1)
    b_col = b.astype(jnp.float32).reshape(Cout, 1)
    g_col = gamma.astype(jnp.float32).reshape(Cout, 1)
    bt_col = beta.astype(jnp.float32).reshape(Cout, 1)
    masks = jnp.asarray(_tap_masks_np(H, W, KH, KW, padding))   # trace-time const

    # VMEM budget: inputs + output + in-kernel temporaries, generous padding
    # factor; clamp well under v7x's 32 MiB scoped default / 64 MiB physical.
    data_bytes = 4 * (N * Cin * HW + N * Cout * HW + KH * KW * HW
                      + KH * KW * Cin * Cout + 3 * Cout)
    vmem_limit = int(min(32 * 1024 * 1024, max(4 * 1024 * 1024, 32 * data_bytes)))

    cost = pl.CostEstimate(
        flops=2 * N * Cout * Cin * KH * KW * HW + 10 * N * Cout * HW,
        transcendentals=Cout,
        bytes_accessed=data_bytes,
    )

    y = pl.pallas_call(
        functools.partial(_sameblock_kernel, N=N, Cin=Cin, Cout=Cout,
                          H=H, W=W, KH=KH, KW=KW, P=padding),
        grid=(1,),
        in_specs=[
            pl.BlockSpec((N * Cin, HW), lambda i: (0, 0)),
            pl.BlockSpec((KH * KW * Cin, Cout, 1), lambda i: (0, 0, 0)),
            pl.BlockSpec((Cout, 1), lambda i: (0, 0)),
            pl.BlockSpec((KH * KW, 1, HW), lambda i: (0, 0, 0)),
            pl.BlockSpec((Cout, 1), lambda i: (0, 0)),
            pl.BlockSpec((Cout, 1), lambda i: (0, 0)),
        ],
        out_specs=pl.BlockSpec((N, Cout, HW), lambda i: (0, 0, 0)),
        out_shape=jax.ShapeDtypeStruct((N, Cout, HW), jnp.float32),
        compiler_params=pltpu.CompilerParams(
            dimension_semantics=("arbitrary",),
            vmem_limit_bytes=vmem_limit),
        cost_estimate=cost,
    )(x2, w_cols, b_col, masks, g_col, bt_col)

    return y.reshape(N, Cout, H, W)


def _reference_forward(x, params, padding):
    """Pure-JAX NCHW reference (Conv -> training-mode BN -> ReLU)."""
    w, b, gamma, beta = params
    y = jax.lax.conv_general_dilated(
        x, w, window_strides=(1, 1),
        padding=[(padding, padding), (padding, padding)],
        dimension_numbers=("NCHW", "OIHW", "NCHW"))
    y = y + b.reshape(1, -1, 1, 1)
    mean = jnp.mean(y, axis=(0, 2, 3), keepdims=True)
    var = jnp.mean(jnp.square(y - mean), axis=(0, 2, 3), keepdims=True)
    yn = (y - mean) * jax.lax.rsqrt(var + EPS)
    yn = yn * gamma.reshape(1, -1, 1, 1) + beta.reshape(1, -1, 1, 1)
    return jnp.maximum(yn, 0.0)


def init_params(key, in_features, out_features, kernel_size):
    ks = jax.random.split(key, 4)
    scale = 1.0 / np.sqrt(in_features * kernel_size * kernel_size)
    w = jax.random.uniform(
        ks[0], (out_features, in_features, kernel_size, kernel_size),
        jnp.float32, -scale, scale)
    b = jax.random.uniform(ks[1], (out_features,), jnp.float32, -scale, scale)
    gamma = jax.random.uniform(ks[2], (out_features,), jnp.float32, 0.5, 1.5)
    beta = jax.random.uniform(ks[3], (out_features,), jnp.float32, -0.5, 0.5)
    return (w, b, gamma, beta)


if __name__ == "__main__":
    key = jax.random.PRNGKey(0)
    k_x, k_p = jax.random.split(key)

    N, Cin, Cout, H, W = 2, 4, 4, 16, 16
    kernel_size, padding = 3, 1

    x = jax.random.normal(k_x, (N, Cin, H, W), jnp.float32)
    params = init_params(k_p, Cin, Cout, kernel_size)

    out = jax.block_until_ready(sameblock2d_forward(x, params, padding))
    ref = jax.block_until_ready(_reference_forward(x, params, padding))

    if not np.allclose(np.asarray(out), np.asarray(ref), atol=1e-4, rtol=1e-4):
        raise AssertionError("Pallas SameBlock2d does not match JAX reference")

    print("KERNEL_OK")
</pallas_src>

<mosaic_0001>
module attributes {stable_mosaic.version = 11 : i64} {
  func.func @_sameblock_kernel(%arg0: i32, %arg1: memref<8x256xf32, #tpu.memory_space<vmem>>, %arg2: memref<36x4x1xf32, #tpu.memory_space<vmem>>, %arg3: memref<4x1xf32, #tpu.memory_space<vmem>>, %arg4: memref<9x1x256xf32, #tpu.memory_space<vmem>>, %arg5: memref<4x1xf32, #tpu.memory_space<vmem>>, %arg6: memref<4x1xf32, #tpu.memory_space<vmem>>, %arg7: memref<2x4x256xf32, #tpu.memory_space<vmem>>) attributes {dimension_semantics = [#tpu.dimension_semantics<arbitrary>], iteration_bounds = array<i64: 1>, scalar_prefetch = 0 : i64, scratch_operands = 0 : i64, tpu.core_type = #tpu.core_type<tc>, window_params = [{pipeline_mode = #tpu.pipeline_mode<synchronous>, transform_indices = @transform_0, window_bounds = array<i64: 8, 256>}, {pipeline_mode = #tpu.pipeline_mode<synchronous>, transform_indices = @transform_1, window_bounds = array<i64: 36, 4, 1>}, {pipeline_mode = #tpu.pipeline_mode<synchronous>, transform_indices = @transform_2, window_bounds = array<i64: 4, 1>}, {pipeline_mode = #tpu.pipeline_mode<synchronous>, transform_indices = @transform_3, window_bounds = array<i64: 9, 1, 256>}, {pipeline_mode = #tpu.pipeline_mode<synchronous>, transform_indices = @transform_4, window_bounds = array<i64: 4, 1>}, {pipeline_mode = #tpu.pipeline_mode<synchronous>, transform_indices = @transform_5, window_bounds = array<i64: 4, 1>}, {pipeline_mode = #tpu.pipeline_mode<synchronous>, transform_indices = @transform_6, window_bounds = array<i64: 2, 4, 256>}]} {
    %c0 = arith.constant 0 : index
    %c0_0 = arith.constant 0 : index
    %0 = vector.load %arg1[%c0, %c0_0] : memref<8x256xf32, #tpu.memory_space<vmem>>, vector<8x256xf32>
    %c0_1 = arith.constant 0 : index
    %c0_2 = arith.constant 0 : index
    %1 = vector.load %arg3[%c0_1, %c0_2] : memref<4x1xf32, #tpu.memory_space<vmem>>, vector<4x1xf32>
    %2 = vector.shape_cast %1 : vector<4x1xf32> to vector<4x1xf32>
    %3 = vector.broadcast %2 : vector<4x1xf32> to vector<4x256xf32>
    %c17_i32 = arith.constant 17 : i32
    %4 = tpu.dynamic_rotate %0 by %c17_i32 dim 1 : vector<8x256xf32>, i32 -> vector<8x256xf32>
    %c0_3 = arith.constant 0 : index
    %c0_4 = arith.constant 0 : index
    %c0_5 = arith.constant 0 : index
    %5 = vector.load %arg4[%c0_3, %c0_4, %c0_5] : memref<9x1x256xf32, #tpu.memory_space<vmem>>, vector<1x1x256xf32>
    %6 = vector.shape_cast %5 : vector<1x1x256xf32> to vector<1x256xf32>
    %7 = vector.broadcast %6 : vector<1x256xf32> to vector<8x256xf32>
    %8 = arith.mulf %4, %7 : vector<8x256xf32>
    %c0_6 = arith.constant 0 : index
    %c0_7 = arith.constant 0 : index
    %c0_8 = arith.constant 0 : index
    %9 = vector.load %arg2[%c0_6, %c0_7, %c0_8] : memref<36x4x1xf32, #tpu.memory_space<vmem>>, vector<1x4x1xf32>
    %10 = vector.shape_cast %9 : vector<1x4x1xf32> to vector<4x1xf32>
    %11 = vector.extract_strided_slice %8 {offsets = [0, 0], sizes = [1, 256], strides = [1, 1]} : vector<8x256xf32> to vector<1x256xf32>
    %12 = vector.broadcast %10 : vector<4x1xf32> to vector<4x256xf32>
    %13 = vector.broadcast %11 : vector<1x256xf32> to vector<4x256xf32>
    %14 = arith.mulf %12, %13 : vector<4x256xf32>
    %15 = arith.addf %3, %14 : vector<4x256xf32>
    %16 = vector.extract_strided_slice %8 {offsets = [4, 0], sizes = [1, 256], strides = [1, 1]} : vector<8x256xf32> to vector<1x256xf32>
    %17 = vector.broadcast %10 : vector<4x1xf32> to vector<4x256xf32>
    %18 = vector.broadcast %16 : vector<1x256xf32> to vector<4x256xf32>
    %19 = arith.mulf %17, %18 : vector<4x256xf32>
    %20 = arith.addf %3, %19 : vector<4x256xf32>
    %c1 = arith.constant 1 : index
    %c0_9 = arith.constant 0 : index
    %c0_10 = arith.constant 0 : index
    %21 = vector.load %arg2[%c1, %c0_9, %c0_10] : memref<36x4x1xf32, #tpu.memory_space<vmem>>, vector<1x4x1xf32>
    %22 = vector.shape_cast %21 : vector<1x4x1xf32> to vector<4x1xf32>
    %23 = vector.extract_strided_slice %8 {offsets = [1, 0], sizes = [1, 256], strides = [1, 1]} : vector<8x256xf32> to vector<1x256xf32>
    %24 = vector.broadcast %22 : vector<4x1xf32> to vector<4x256xf32>
    %25 = vector.broadcast %23 : vector<1x256xf32> to vector<4x256xf32>
    %26 = arith.mulf %24, %25 : vector<4x256xf32>
    %27 = arith.addf %15, %26 : vector<4x256xf32>
    %28 = vector.extract_strided_slice %8 {offsets = [5, 0], sizes = [1, 256], strides = [1, 1]} : vector<8x256xf32> to vector<1x256xf32>
    %29 = vector.broadcast %22 : vector<4x1xf32> to vector<4x256xf32>
    %30 = vector.broadcast %28 : vector<1x256xf32> to vector<4x256xf32>
    %31 = arith.mulf %29, %30 : vector<4x256xf32>
    %32 = arith.addf %20, %31 : vector<4x256xf32>
    %c2 = arith.constant 2 : index
    %c0_11 = arith.constant 0 : index
    %c0_12 = arith.constant 0 : index
    %33 = vector.load %arg2[%c2, %c0_11, %c0_12] : memref<36x4x1xf32, #tpu.memory_space<vmem>>, vector<1x4x1xf32>
    %34 = vector.shape_cast %33 : vector<1x4x1xf32> to vector<4x1xf32>
    %35 = vector.extract_strided_slice %8 {offsets = [2, 0], sizes = [1, 256], strides = [1, 1]} : vector<8x256xf32> to vector<1x256xf32>
    %36 = vector.broadcast %34 : vector<4x1xf32> to vector<4x256xf32>
    %37 = vector.broadcast %35 : vector<1x256xf32> to vector<4x256xf32>
    %38 = arith.mulf %36, %37 : vector<4x256xf32>
    %39 = arith.addf %27, %38 : vector<4x256xf32>
    %40 = vector.extract_strided_slice %8 {offsets = [6, 0], sizes = [1, 256], strides = [1, 1]} : vector<8x256xf32> to vector<1x256xf32>
    %41 = vector.broadcast %34 : vector<4x1xf32> to vector<4x256xf32>
    %42 = vector.broadcast %40 : vector<1x256xf32> to vector<4x256xf32>
    %43 = arith.mulf %41, %42 : vector<4x256xf32>
    %44 = arith.addf %32, %43 : vector<4x256xf32>
    %c3 = arith.constant 3 : index
    %c0_13 = arith.constant 0 : index
    %c0_14 = arith.constant 0 : index
    %45 = vector.load %arg2[%c3, %c0_13, %c0_14] : memref<36x4x1xf32, #tpu.memory_space<vmem>>, vector<1x4x1xf32>
    %46 = vector.shape_cast %45 : vector<1x4x1xf32> to vector<4x1xf32>
    %47 = vector.extract_strided_slice %8 {offsets = [3, 0], sizes = [1, 256], strides = [1, 1]} : vector<8x256xf32> to vector<1x256xf32>
    %48 = vector.broadcast %46 : vector<4x1xf32> to vector<4x256xf32>
    %49 = vector.broadcast %47 : vector<1x256xf32> to vector<4x256xf32>
    %50 = arith.mulf %48, %49 : vector<4x256xf32>
    %51 = arith.addf %39, %50 : vector<4x256xf32>
    %52 = vector.extract_strided_slice %8 {offsets = [7, 0], sizes = [1, 256], strides = [1, 1]} : vector<8x256xf32> to vector<1x256xf32>
    %53 = vector.broadcast %46 : vector<4x1xf32> to vector<4x256xf32>
    %54 = vector.broadcast %52 : vector<1x256xf32> to vector<4x256xf32>
    %55 = arith.mulf %53, %54 : vector<4x256xf32>
    %56 = arith.addf %44, %55 : vector<4x256xf32>
    %c16_i32 = arith.constant 16 : i32
    %57 = tpu.dynamic_rotate %0 by %c16_i32 dim 1 : vector<8x256xf32>, i32 -> vector<8x256xf32>
    %c1_15 = arith.constant 1 : index
    %c0_16 = arith.constant 0 : index
    %c0_17 = arith.constant 0 : index
    %58 = vector.load %arg4[%c1_15, %c0_16, %c0_17] : memref<9x1x256xf32, #tpu.memory_space<vmem>>, vector<1x1x256xf32>
    %59 = vector.shape_cast %58 : vector<1x1x256xf32> to vector<1x256xf32>
    %60 = vector.broadcast %59 : vector<1x256xf32> to vector<8x256xf32>
    %61 = arith.mulf %57, %60 : vector<8x256xf32>
    %c4 = arith.constant 4 : index
    %c0_18 = arith.constant 0 : index
    %c0_19 = arith.constant 0 : index
    %62 = vector.load %arg2[%c4, %c0_18, %c0_19] : memref<36x4x1xf32, #tpu.memory_space<vmem>>, vector<1x4x1xf32>
    %63 = vector.shape_cast %62 : vector<1x4x1xf32> to vector<4x1xf32>
    %64 = vector.extract_strided_slice %61 {offsets = [0, 0], sizes = [1, 256], strides = [1, 1]} : vector<8x256xf32> to vector<1x256xf32>
    %65 = vector.broadcast %63 : vector<4x1xf32> to vector<4x256xf32>
    %66 = vector.broadcast %64 : vector<1x256xf32> to vector<4x256xf32>
    %67 = arith.mulf %65, %66 : vector<4x256xf32>
    %68 = arith.addf %51, %67 : vector<4x256xf32>
    %69 = vector.extract_strided_slice %61 {offsets = [4, 0], sizes = [1, 256], strides = [1, 1]} : vector<8x256xf32> to vector<1x256xf32>
    %70 = vector.broadcast %63 : vector<4x1xf32> to vector<4x256xf32>
    %71 = vector.broadcast %69 : vector<1x256xf32> to vector<4x256xf32>
    %72 = arith.mulf %70, %71 : vector<4x256xf32>
    %73 = arith.addf %56, %72 : vector<4x256xf32>
    %c5 = arith.constant 5 : index
    %c0_20 = arith.constant 0 : index
    %c0_21 = arith.constant 0 : index
    %74 = vector.load %arg2[%c5, %c0_20, %c0_21] : memref<36x4x1xf32, #tpu.memory_space<vmem>>, vector<1x4x1xf32>
    %75 = vector.shape_cast %74 : vector<1x4x1xf32> to vector<4x1xf32>
    %76 = vector.extract_strided_slice %61 {offsets = [1, 0], sizes = [1, 256], strides = [1, 1]} : vector<8x256xf32> to vector<1x256xf32>
    %77 = vector.broadcast %75 : vector<4x1xf32> to vector<4x256xf32>
    %78 = vector.broadcast %76 : vector<1x256xf32> to vector<4x256xf32>
    %79 = arith.mulf %77, %78 : vector<4x256xf32>
    %80 = arith.addf %68, %79 : vector<4x256xf32>
    %81 = vector.extract_strided_slice %61 {offsets = [5, 0], sizes = [1, 256], strides = [1, 1]} : vector<8x256xf32> to vector<1x256xf32>
    %82 = vector.broadcast %75 : vector<4x1xf32> to vector<4x256xf32>
    %83 = vector.broadcast %81 : vector<1x256xf32> to vector<4x256xf32>
    %84 = arith.mulf %82, %83 : vector<4x256xf32>
    %85 = arith.addf %73, %84 : vector<4x256xf32>
    %c6 = arith.constant 6 : index
    %c0_22 = arith.constant 0 : index
    %c0_23 = arith.constant 0 : index
    %86 = vector.load %arg2[%c6, %c0_22, %c0_23] : memref<36x4x1xf32, #tpu.memory_space<vmem>>, vector<1x4x1xf32>
    %87 = vector.shape_cast %86 : vector<1x4x1xf32> to vector<4x1xf32>
    %88 = vector.extract_strided_slice %61 {offsets = [2, 0], sizes = [1, 256], strides = [1, 1]} : vector<8x256xf32> to vector<1x256xf32>
    %89 = vector.broadcast %87 : vector<4x1xf32> to vector<4x256xf32>
    %90 = vector.broadcast %88 : vector<1x256xf32> to vector<4x256xf32>
    %91 = arith.mulf %89, %90 : vector<4x256xf32>
    %92 = arith.addf %80, %91 : vector<4x256xf32>
    %93 = vector.extract_strided_slice %61 {offsets = [6, 0], sizes = [1, 256], strides = [1, 1]} : vector<8x256xf32> to vector<1x256xf32>
    %94 = vector.broadcast %87 : vector<4x1xf32> to vector<4x256xf32>
    %95 = vector.broadcast %93 : vector<1x256xf32> to vector<4x256xf32>
    %96 = arith.mulf %94, %95 : vector<4x256xf32>
    %97 = arith.addf %85, %96 : vector<4x256xf32>
    %c7 = arith.constant 7 : index
    %c0_24 = arith.constant 0 : index
    %c0_25 = arith.constant 0 : index
    %98 = vector.load %arg2[%c7, %c0_24, %c0_25] : memref<36x4x1xf32, #tpu.memory_space<vmem>>, vector<1x4x1xf32>
    %99 = vector.shape_cast %98 : vector<1x4x1xf32> to vector<4x1xf32>
    %100 = vector.extract_strided_slice %61 {offsets = [3, 0], sizes = [1, 256], strides = [1, 1]} : vector<8x256xf32> to vector<1x256xf32>
    %101 = vector.broadcast %99 : vector<4x1xf32> to vector<4x256xf32>
    %102 = vector.broadcast %100 : vector<1x256xf32> to vector<4x256xf32>
    %103 = arith.mulf %101, %102 : vector<4x256xf32>
    %104 = arith.addf %92, %103 : vector<4x256xf32>
    %105 = vector.extract_strided_slice %61 {offsets = [7, 0], sizes = [1, 256], strides = [1, 1]} : vector<8x256xf32> to vector<1x256xf32>
    %106 = vector.broadcast %99 : vector<4x1xf32> to vector<4x256xf32>
    %107 = vector.broadcast %105 : vector<1x256xf32> to vector<4x256xf32>
    %108 = arith.mulf %106, %107 : vector<4x256xf32>
    %109 = arith.addf %97, %108 : vector<4x256xf32>
    %c15_i32 = arith.constant 15 : i32
    %110 = tpu.dynamic_rotate %0 by %c15_i32 dim 1 : vector<8x256xf32>, i32 -> vector<8x256xf32>
    %c2_26 = arith.constant 2 : index
    %c0_27 = arith.constant 0 : index
    %c0_28 = arith.constant 0 : index
    %111 = vector.load %arg4[%c2_26, %c0_27, %c0_28] : memref<9x1x256xf32, #tpu.memory_space<vmem>>, vector<1x1x256xf32>
    %112 = vector.shape_cast %111 : vector<1x1x256xf32> to vector<1x256xf32>
    %113 = vector.broadcast %112 : vector<1x256xf32> to vector<8x256xf32>
    %114 = arith.mulf %110, %113 : vector<8x256xf32>
    %c8 = arith.constant 8 : index
    %c0_29 = arith.constant 0 : index
    %c0_30 = arith.constant 0 : index
    %115 = vector.load %arg2[%c8, %c0_29, %c0_30] : memref<36x4x1xf32, #tpu.memory_space<vmem>>, vector<1x4x1xf32>
    %116 = vector.shape_cast %115 : vector<1x4x1xf32> to vector<4x1xf32>
    %117 = vector.extract_strided_slice %114 {offsets = [0, 0], sizes = [1, 256], strides = [1, 1]} : vector<8x256xf32> to vector<1x256xf32>
    %118 = vector.broadcast %116 : vector<4x1xf32> to vector<4x256xf32>
    %119 = vector.broadcast %117 : vector<1x256xf32> to vector<4x256xf32>
    %120 = arith.mulf %118, %119 : vector<4x256xf32>
    %121 = arith.addf %104, %120 : vector<4x256xf32>
    %122 = vector.extract_strided_slice %114 {offsets = [4, 0], sizes = [1, 256], strides = [1, 1]} : vector<8x256xf32> to vector<1x256xf32>
    %123 = vector.broadcast %116 : vector<4x1xf32> to vector<4x256xf32>
    %124 = vector.broadcast %122 : vector<1x256xf32> to vector<4x256xf32>
    %125 = arith.mulf %123, %124 : vector<4x256xf32>
    %126 = arith.addf %109, %125 : vector<4x256xf32>
    %c9 = arith.constant 9 : index
    %c0_31 = arith.constant 0 : index
    %c0_32 = arith.constant 0 : index
    %127 = vector.load %arg2[%c9, %c0_31, %c0_32] : memref<36x4x1xf32, #tpu.memory_space<vmem>>, vector<1x4x1xf32>
    %128 = vector.shape_cast %127 : vector<1x4x1xf32> to vector<4x1xf32>
    %129 = vector.extract_strided_slice %114 {offsets = [1, 0], sizes = [1, 256], strides = [1, 1]} : vector<8x256xf32> to vector<1x256xf32>
    %130 = vector.broadcast %128 : vector<4x1xf32> to vector<4x256xf32>
    %131 = vector.broadcast %129 : vector<1x256xf32> to vector<4x256xf32>
    %132 = arith.mulf %130, %131 : vector<4x256xf32>
    %133 = arith.addf %121, %132 : vector<4x256xf32>
    %134 = vector.extract_strided_slice %114 {offsets = [5, 0], sizes = [1, 256], strides = [1, 1]} : vector<8x256xf32> to vector<1x256xf32>
    %135 = vector.broadcast %128 : vector<4x1xf32> to vector<4x256xf32>
    %136 = vector.broadcast %134 : vector<1x256xf32> to vector<4x256xf32>
    %137 = arith.mulf %135, %136 : vector<4x256xf32>
    %138 = arith.addf %126, %137 : vector<4x256xf32>
    %c10 = arith.constant 10 : index
    %c0_33 = arith.constant 0 : index
    %c0_34 = arith.constant 0 : index
    %139 = vector.load %arg2[%c10, %c0_33, %c0_34] : memref<36x4x1xf32, #tpu.memory_space<vmem>>, vector<1x4x1xf32>
    %140 = vector.shape_cast %139 : vector<1x4x1xf32> to vector<4x1xf32>
    %141 = vector.extract_strided_slice %114 {offsets = [2, 0], sizes = [1, 256], strides = [1, 1]} : vector<8x256xf32> to vector<1x256xf32>
    %142 = vector.broadcast %140 : vector<4x1xf32> to vector<4x256xf32>
    %143 = vector.broadcast %141 : vector<1x256xf32> to vector<4x256xf32>
    %144 = arith.mulf %142, %143 : vector<4x256xf32>
    %145 = arith.addf %133, %144 : vector<4x256xf32>
    %146 = vector.extract_strided_slice %114 {offsets = [6, 0], sizes = [1, 256], strides = [1, 1]} : vector<8x256xf32> to vector<1x256xf32>
    %147 = vector.broadcast %140 : vector<4x1xf32> to vector<4x256xf32>
    %148 = vector.broadcast %146 : vector<1x256xf32> to vector<4x256xf32>
    %149 = arith.mulf %147, %148 : vector<4x256xf32>
    %150 = arith.addf %138, %149 : vector<4x256xf32>
    %c11 = arith.constant 11 : index
    %c0_35 = arith.constant 0 : index
    %c0_36 = arith.constant 0 : index
    %151 = vector.load %arg2[%c11, %c0_35, %c0_36] : memref<36x4x1xf32, #tpu.memory_space<vmem>>, vector<1x4x1xf32>
    %152 = vector.shape_cast %151 : vector<1x4x1xf32> to vector<4x1xf32>
    %153 = vector.extract_strided_slice %114 {offsets = [3, 0], sizes = [1, 256], strides = [1, 1]} : vector<8x256xf32> to vector<1x256xf32>
    %154 = vector.broadcast %152 : vector<4x1xf32> to vector<4x256xf32>
    %155 = vector.broadcast %153 : vector<1x256xf32> to vector<4x256xf32>
    %156 = arith.mulf %154, %155 : vector<4x256xf32>
    %157 = arith.addf %145, %156 : vector<4x256xf32>
    %158 = vector.extract_strided_slice %114 {offsets = [7, 0], sizes = [1, 256], strides = [1, 1]} : vector<8x256xf32> to vector<1x256xf32>
    %159 = vector.broadcast %152 : vector<4x1xf32> to vector<4x256xf32>
    %160 = vector.broadcast %158 : vector<1x256xf32> to vector<4x256xf32>
    %161 = arith.mulf %159, %160 : vector<4x256xf32>
    %162 = arith.addf %150, %161 : vector<4x256xf32>
    %c1_i32 = arith.constant 1 : i32
    %163 = tpu.dynamic_rotate %0 by %c1_i32 dim 1 : vector<8x256xf32>, i32 -> vector<8x256xf32>
    %c3_37 = arith.constant 3 : index
    %c0_38 = arith.constant 0 : index
    %c0_39 = arith.constant 0 : index
    %164 = vector.load %arg4[%c3_37, %c0_38, %c0_39] : memref<9x1x256xf32, #tpu.memory_space<vmem>>, vector<1x1x256xf32>
    %165 = vector.shape_cast %164 : vector<1x1x256xf32> to vector<1x256xf32>
    %166 = vector.broadcast %165 : vector<1x256xf32> to vector<8x256xf32>
    %167 = arith.mulf %163, %166 : vector<8x256xf32>
    %c12 = arith.constant 12 : index
    %c0_40 = arith.constant 0 : index
    %c0_41 = arith.constant 0 : index
    %168 = vector.load %arg2[%c12, %c0_40, %c0_41] : memref<36x4x1xf32, #tpu.memory_space<vmem>>, vector<1x4x1xf32>
    %169 = vector.shape_cast %168 : vector<1x4x1xf32> to vector<4x1xf32>
    %170 = vector.extract_strided_slice %167 {offsets = [0, 0], sizes = [1, 256], strides = [1, 1]} : vector<8x256xf32> to vector<1x256xf32>
    %171 = vector.broadcast %169 : vector<4x1xf32> to vector<4x256xf32>
    %172 = vector.broadcast %170 : vector<1x256xf32> to vector<4x256xf32>
    %173 = arith.mulf %171, %172 : vector<4x256xf32>
    %174 = arith.addf %157, %173 : vector<4x256xf32>
    %175 = vector.extract_strided_slice %167 {offsets = [4, 0], sizes = [1, 256], strides = [1, 1]} : vector<8x256xf32> to vector<1x256xf32>
    %176 = vector.broadcast %169 : vector<4x1xf32> to vector<4x256xf32>
    %177 = vector.broadcast %175 : vector<1x256xf32> to vector<4x256xf32>
    %178 = arith.mulf %176, %177 : vector<4x256xf32>
    %179 = arith.addf %162, %178 : vector<4x256xf32>
    %c13 = arith.constant 13 : index
    %c0_42 = arith.constant 0 : index
    %c0_43 = arith.constant 0 : index
    %180 = vector.load %arg2[%c13, %c0_42, %c0_43] : memref<36x4x1xf32, #tpu.memory_space<vmem>>, vector<1x4x1xf32>
    %181 = vector.shape_cast %180 : vector<1x4x1xf32> to vector<4x1xf32>
    %182 = vector.extract_strided_slice %167 {offsets = [1, 0], sizes = [1, 256], strides = [1, 1]} : vector<8x256xf32> to vector<1x256xf32>
    %183 = vector.broadcast %181 : vector<4x1xf32> to vector<4x256xf32>
    %184 = vector.broadcast %182 : vector<1x256xf32> to vector<4x256xf32>
    %185 = arith.mulf %183, %184 : vector<4x256xf32>
    %186 = arith.addf %174, %185 : vector<4x256xf32>
    %187 = vector.extract_strided_slice %167 {offsets = [5, 0], sizes = [1, 256], strides = [1, 1]} : vector<8x256xf32> to vector<1x256xf32>
    %188 = vector.broadcast %181 : vector<4x1xf32> to vector<4x256xf32>
    %189 = vector.broadcast %187 : vector<1x256xf32> to vector<4x256xf32>
    %190 = arith.mulf %188, %189 : vector<4x256xf32>
    %191 = arith.addf %179, %190 : vector<4x256xf32>
    %c14 = arith.constant 14 : index
    %c0_44 = arith.constant 0 : index
    %c0_45 = arith.constant 0 : index
    %192 = vector.load %arg2[%c14, %c0_44, %c0_45] : memref<36x4x1xf32, #tpu.memory_space<vmem>>, vector<1x4x1xf32>
    %193 = vector.shape_cast %192 : vector<1x4x1xf32> to vector<4x1xf32>
    %194 = vector.extract_strided_slice %167 {offsets = [2, 0], sizes = [1, 256], strides = [1, 1]} : vector<8x256xf32> to vector<1x256xf32>
    %195 = vector.broadcast %193 : vector<4x1xf32> to vector<4x256xf32>
    %196 = vector.broadcast %194 : vector<1x256xf32> to vector<4x256xf32>
    %197 = arith.mulf %195, %196 : vector<4x256xf32>
    %198 = arith.addf %186, %197 : vector<4x256xf32>
    %199 = vector.extract_strided_slice %167 {offsets = [6, 0], sizes = [1, 256], strides = [1, 1]} : vector<8x256xf32> to vector<1x256xf32>
    %200 = vector.broadcast %193 : vector<4x1xf32> to vector<4x256xf32>
    %201 = vector.broadcast %199 : vector<1x256xf32> to vector<4x256xf32>
    %202 = arith.mulf %200, %201 : vector<4x256xf32>
    %203 = arith.addf %191, %202 : vector<4x256xf32>
    %c15 = arith.constant 15 : index
    %c0_46 = arith.constant 0 : index
    %c0_47 = arith.constant 0 : index
    %204 = vector.load %arg2[%c15, %c0_46, %c0_47] : memref<36x4x1xf32, #tpu.memory_space<vmem>>, vector<1x4x1xf32>
    %205 = vector.shape_cast %204 : vector<1x4x1xf32> to vector<4x1xf32>
    %206 = vector.extract_strided_slice %167 {offsets = [3, 0], sizes = [1, 256], strides = [1, 1]} : vector<8x256xf32> to vector<1x256xf32>
    %207 = vector.broadcast %205 : vector<4x1xf32> to vector<4x256xf32>
    %208 = vector.broadcast %206 : vector<1x256xf32> to vector<4x256xf32>
    %209 = arith.mulf %207, %208 : vector<4x256xf32>
    %210 = arith.addf %198, %209 : vector<4x256xf32>
    %211 = vector.extract_strided_slice %167 {offsets = [7, 0], sizes = [1, 256], strides = [1, 1]} : vector<8x256xf32> to vector<1x256xf32>
    %212 = vector.broadcast %205 : vector<4x1xf32> to vector<4x256xf32>
    %213 = vector.broadcast %211 : vector<1x256xf32> to vector<4x256xf32>
    %214 = arith.mulf %212, %213 : vector<4x256xf32>
    %215 = arith.addf %203, %214 : vector<4x256xf32>
    %c16 = arith.constant 16 : index
    %c0_48 = arith.constant 0 : index
    %c0_49 = arith.constant 0 : index
    %216 = vector.load %arg2[%c16, %c0_48, %c0_49] : memref<36x4x1xf32, #tpu.memory_space<vmem>>, vector<1x4x1xf32>
    %217 = vector.shape_cast %216 : vector<1x4x1xf32> to vector<4x1xf32>
    %218 = vector.extract_strided_slice %0 {offsets = [0, 0], sizes = [1, 256], strides = [1, 1]} : vector<8x256xf32> to vector<1x256xf32>
    %219 = vector.broadcast %217 : vector<4x1xf32> to vector<4x256xf32>
    %220 = vector.broadcast %218 : vector<1x256xf32> to vector<4x256xf32>
    %221 = arith.mulf %219, %220 : vector<4x256xf32>
    %222 = arith.addf %210, %221 : vector<4x256xf32>
    %223 = vector.extract_strided_slice %0 {offsets = [4, 0], sizes = [1, 256], strides = [1, 1]} : vector<8x256xf32> to vector<1x256xf32>
    %224 = vector.broadcast %217 : vector<4x1xf32> to vector<4x256xf32>
    %225 = vector.broadcast %223 : vector<1x256xf32> to vector<4x256xf32>
    %226 = arith.mulf %224, %225 : vector<4x256xf32>
    %227 = arith.addf %215, %226 : vector<4x256xf32>
    %c17 = arith.constant 17 : index
    %c0_50 = arith.constant 0 : index
    %c0_51 = arith.constant 0 : index
    %228 = vector.load %arg2[%c17, %c0_50, %c0_51] : memref<36x4x1xf32, #tpu.memory_space<vmem>>, vector<1x4x1xf32>
    %229 = vector.shape_cast %228 : vector<1x4x1xf32> to vector<4x1xf32>
    %230 = vector.extract_strided_slice %0 {offsets = [1, 0], sizes = [1, 256], strides = [1, 1]} : vector<8x256xf32> to vector<1x256xf32>
    %231 = vector.broadcast %229 : vector<4x1xf32> to vector<4x256xf32>
    %232 = vector.broadcast %230 : vector<1x256xf32> to vector<4x256xf32>
    %233 = arith.mulf %231, %232 : vector<4x256xf32>
    %234 = arith.addf %222, %233 : vector<4x256xf32>
    %235 = vector.extract_strided_slice %0 {offsets = [5, 0], sizes = [1, 256], strides = [1, 1]} : vector<8x256xf32> to vector<1x256xf32>
    %236 = vector.broadcast %229 : vector<4x1xf32> to vector<4x256xf32>
    %237 = vector.broadcast %235 : vector<1x256xf32> to vector<4x256xf32>
    %238 = arith.mulf %236, %237 : vector<4x256xf32>
    %239 = arith.addf %227, %238 : vector<4x256xf32>
    %c18 = arith.constant 18 : index
    %c0_52 = arith.constant 0 : index
    %c0_53 = arith.constant 0 : index
    %240 = vector.load %arg2[%c18, %c0_52, %c0_53] : memref<36x4x1xf32, #tpu.memory_space<vmem>>, vector<1x4x1xf32>
    %241 = vector.shape_cast %240 : vector<1x4x1xf32> to vector<4x1xf32>
    %242 = vector.extract_strided_slice %0 {offsets = [2, 0], sizes = [1, 256], strides = [1, 1]} : vector<8x256xf32> to vector<1x256xf32>
    %243 = vector.broadcast %241 : vector<4x1xf32> to vector<4x256xf32>
    %244 = vector.broadcast %242 : vector<1x256xf32> to vector<4x256xf32>
    %245 = arith.mulf %243, %244 : vector<4x256xf32>
    %246 = arith.addf %234, %245 : vector<4x256xf32>
    %247 = vector.extract_strided_slice %0 {offsets = [6, 0], sizes = [1, 256], strides = [1, 1]} : vector<8x256xf32> to vector<1x256xf32>
    %248 = vector.broadcast %241 : vector<4x1xf32> to vector<4x256xf32>
    %249 = vector.broadcast %247 : vector<1x256xf32> to vector<4x256xf32>
    %250 = arith.mulf %248, %249 : vector<4x256xf32>
    %251 = arith.addf %239, %250 : vector<4x256xf32>
    %c19 = arith.constant 19 : index
    %c0_54 = arith.constant 0 : index
    %c0_55 = arith.constant 0 : index
    %252 = vector.load %arg2[%c19, %c0_54, %c0_55] : memref<36x4x1xf32, #tpu.memory_space<vmem>>, vector<1x4x1xf32>
    %253 = vector.shape_cast %252 : vector<1x4x1xf32> to vector<4x1xf32>
    %254 = vector.extract_strided_slice %0 {offsets = [3, 0], sizes = [1, 256], strides = [1, 1]} : vector<8x256xf32> to vector<1x256xf32>
    %255 = vector.broadcast %253 : vector<4x1xf32> to vector<4x256xf32>
    %256 = vector.broadcast %254 : vector<1x256xf32> to vector<4x256xf32>
    %257 = arith.mulf %255, %256 : vector<4x256xf32>
    %258 = arith.addf %246, %257 : vector<4x256xf32>
    %259 = vector.extract_strided_slice %0 {offsets = [7, 0], sizes = [1, 256], strides = [1, 1]} : vector<8x256xf32> to vector<1x256xf32>
    %260 = vector.broadcast %253 : vector<4x1xf32> to vector<4x256xf32>
    %261 = vector.broadcast %259 : vector<1x256xf32> to vector<4x256xf32>
    %262 = arith.mulf %260, %261 : vector<4x256xf32>
    %263 = arith.addf %251, %262 : vector<4x256xf32>
    %c255_i32 = arith.constant 255 : i32
    %264 = tpu.dynamic_rotate %0 by %c255_i32 dim 1 : vector<8x256xf32>, i32 -> vector<8x256xf32>
    %c5_56 = arith.constant 5 : index
    %c0_57 = arith.constant 0 : index
    %c0_58 = arith.constant 0 : index
    %265 = vector.load %arg4[%c5_56, %c0_57, %c0_58] : memref<9x1x256xf32, #tpu.memory_space<vmem>>, vector<1x1x256xf32>
    %266 = vector.shape_cast %265 : vector<1x1x256xf32> to vector<1x256xf32>
    %267 = vector.broadcast %266 : vector<1x256xf32> to vector<8x256xf32>
    %268 = arith.mulf %264, %267 : vector<8x256xf32>
    %c20 = arith.constant 20 : index
    %c0_59 = arith.constant 0 : index
    %c0_60 = arith.constant 0 : index
    %269 = vector.load %arg2[%c20, %c0_59, %c0_60] : memref<36x4x1xf32, #tpu.memory_space<vmem>>, vector<1x4x1xf32>
    %270 = vector.shape_cast %269 : vector<1x4x1xf32> to vector<4x1xf32>
    %271 = vector.extract_strided_slice %268 {offsets = [0, 0], sizes = [1, 256], strides = [1, 1]} : vector<8x256xf32> to vector<1x256xf32>
    %272 = vector.broadcast %270 : vector<4x1xf32> to vector<4x256xf32>
    %273 = vector.broadcast %271 : vector<1x256xf32> to vector<4x256xf32>
    %274 = arith.mulf %272, %273 : vector<4x256xf32>
    %275 = arith.addf %258, %274 : vector<4x256xf32>
    %276 = vector.extract_strided_slice %268 {offsets = [4, 0], sizes = [1, 256], strides = [1, 1]} : vector<8x256xf32> to vector<1x256xf32>
    %277 = vector.broadcast %270 : vector<4x1xf32> to vector<4x256xf32>
    %278 = vector.broadcast %276 : vector<1x256xf32> to vector<4x256xf32>
    %279 = arith.mulf %277, %278 : vector<4x256xf32>
    %280 = arith.addf %263, %279 : vector<4x256xf32>
    %c21 = arith.constant 21 : index
    %c0_61 = arith.constant 0 : index
    %c0_62 = arith.constant 0 : index
    %281 = vector.load %arg2[%c21, %c0_61, %c0_62] : memref<36x4x1xf32, #tpu.memory_space<vmem>>, vector<1x4x1xf32>
    %282 = vector.shape_cast %281 : vector<1x4x1xf32> to vector<4x1xf32>
    %283 = vector.extract_strided_slice %268 {offsets = [1, 0], sizes = [1, 256], strides = [1, 1]} : vector<8x256xf32> to vector<1x256xf32>
    %284 = vector.broadcast %282 : vector<4x1xf32> to vector<4x256xf32>
    %285 = vector.broadcast %283 : vector<1x256xf32> to vector<4x256xf32>
    %286 = arith.mulf %284, %285 : vector<4x256xf32>
    %287 = arith.addf %275, %286 : vector<4x256xf32>
    %288 = vector.extract_strided_slice %268 {offsets = [5, 0], sizes = [1, 256], strides = [1, 1]} : vector<8x256xf32> to vector<1x256xf32>
    %289 = vector.broadcast %282 : vector<4x1xf32> to vector<4x256xf32>
    %290 = vector.broadcast %288 : vector<1x256xf32> to vector<4x256xf32>
    %291 = arith.mulf %289, %290 : vector<4x256xf32>
    %292 = arith.addf %280, %291 : vector<4x256xf32>
    %c22 = arith.constant 22 : index
    %c0_63 = arith.constant 0 : index
    %c0_64 = arith.constant 0 : index
    %293 = vector.load %arg2[%c22, %c0_63, %c0_64] : memref<36x4x1xf32, #tpu.memory_space<vmem>>, vector<1x4x1xf32>
    %294 = vector.shape_cast %293 : vector<1x4x1xf32> to vector<4x1xf32>
    %295 = vector.extract_strided_slice %268 {offsets = [2, 0], sizes = [1, 256], strides = [1, 1]} : vector<8x256xf32> to vector<1x256xf32>
    %296 = vector.broadcast %294 : vector<4x1xf32> to vector<4x256xf32>
    %297 = vector.broadcast %295 : vector<1x256xf32> to vector<4x256xf32>
    %298 = arith.mulf %296, %297 : vector<4x256xf32>
    %299 = arith.addf %287, %298 : vector<4x256xf32>
    %300 = vector.extract_strided_slice %268 {offsets = [6, 0], sizes = [1, 256], strides = [1, 1]} : vector<8x256xf32> to vector<1x256xf32>
    %301 = vector.broadcast %294 : vector<4x1xf32> to vector<4x256xf32>
    %302 = vector.broadcast %300 : vector<1x256xf32> to vector<4x256xf32>
    %303 = arith.mulf %301, %302 : vector<4x256xf32>
    %304 = arith.addf %292, %303 : vector<4x256xf32>
    %c23 = arith.constant 23 : index
    %c0_65 = arith.constant 0 : index
    %c0_66 = arith.constant 0 : index
    %305 = vector.load %arg2[%c23, %c0_65, %c0_66] : memref<36x4x1xf32, #tpu.memory_space<vmem>>, vector<1x4x1xf32>
    %306 = vector.shape_cast %305 : vector<1x4x1xf32> to vector<4x1xf32>
    %307 = vector.extract_strided_slice %268 {offsets = [3, 0], sizes = [1, 256], strides = [1, 1]} : vector<8x256xf32> to vector<1x256xf32>
    %308 = vector.broadcast %306 : vector<4x1xf32> to vector<4x256xf32>
    %309 = vector.broadcast %307 : vector<1x256xf32> to vector<4x256xf32>
    %310 = arith.mulf %308, %309 : vector<4x256xf32>
    %311 = arith.addf %299, %310 : vector<4x256xf32>
    %312 = vector.extract_strided_slice %268 {offsets = [7, 0], sizes = [1, 256], strides = [1, 1]} : vector<8x256xf32> to vector<1x256xf32>
    %313 = vector.broadcast %306 : vector<4x1xf32> to vector<4x256xf32>
    %314 = vector.broadcast %312 : vector<1x256xf32> to vector<4x256xf32>
    %315 = arith.mulf %313, %314 : vector<4x256xf32>
    %316 = arith.addf %304, %315 : vector<4x256xf32>
    %c241_i32 = arith.constant 241 : i32
    %317 = tpu.dynamic_rotate %0 by %c241_i32 dim 1 : vector<8x256xf32>, i32 -> vector<8x256xf32>
    %c6_67 = arith.constant 6 : index
    %c0_68 = arith.constant 0 : index
    %c0_69 = arith.constant 0 : index
    %318 = vector.load %arg4[%c6_67, %c0_68, %c0_69] : memref<9x1x256xf32, #tpu.memory_space<vmem>>, vector<1x1x256xf32>
    %319 = vector.shape_cast %318 : vector<1x1x256xf32> to vector<1x256xf32>
    %320 = vector.broadcast %319 : vector<1x256xf32> to vector<8x256xf32>
    %321 = arith.mulf %317, %320 : vector<8x256xf32>
    %c24 = arith.constant 24 : index
    %c0_70 = arith.constant 0 : index
    %c0_71 = arith.constant 0 : index
    %322 = vector.load %arg2[%c24, %c0_70, %c0_71] : memref<36x4x1xf32, #tpu.memory_space<vmem>>, vector<1x4x1xf32>
    %323 = vector.shape_cast %322 : vector<1x4x1xf32> to vector<4x1xf32>
    %324 = vector.extract_strided_slice %321 {offsets = [0, 0], sizes = [1, 256], strides = [1, 1]} : vector<8x256xf32> to vector<1x256xf32>
    %325 = vector.broadcast %323 : vector<4x1xf32> to vector<4x256xf32>
    %326 = vector.broadcast %324 : vector<1x256xf32> to vector<4x256xf32>
    %327 = arith.mulf %325, %326 : vector<4x256xf32>
    %328 = arith.addf %311, %327 : vector<4x256xf32>
    %329 = vector.extract_strided_slice %321 {offsets = [4, 0], sizes = [1, 256], strides = [1, 1]} : vector<8x256xf32> to vector<1x256xf32>
    %330 = vector.broadcast %323 : vector<4x1xf32> to vector<4x256xf32>
    %331 = vector.broadcast %329 : vector<1x256xf32> to vector<4x256xf32>
    %332 = arith.mulf %330, %331 : vector<4x256xf32>
    %333 = arith.addf %316, %332 : vector<4x256xf32>
    %c25 = arith.constant 25 : index
    %c0_72 = arith.constant 0 : index
    %c0_73 = arith.constant 0 : index
    %334 = vector.load %arg2[%c25, %c0_72, %c0_73] : memref<36x4x1xf32, #tpu.memory_space<vmem>>, vector<1x4x1xf32>
    %335 = vector.shape_cast %334 : vector<1x4x1xf32> to vector<4x1xf32>
    %336 = vector.extract_strided_slice %321 {offsets = [1, 0], sizes = [1, 256], strides = [1, 1]} : vector<8x256xf32> to vector<1x256xf32>
    %337 = vector.broadcast %335 : vector<4x1xf32> to vector<4x256xf32>
    %338 = vector.broadcast %336 : vector<1x256xf32> to vector<4x256xf32>
    %339 = arith.mulf %337, %338 : vector<4x256xf32>
    %340 = arith.addf %328, %339 : vector<4x256xf32>
    %341 = vector.extract_strided_slice %321 {offsets = [5, 0], sizes = [1, 256], strides = [1, 1]} : vector<8x256xf32> to vector<1x256xf32>
    %342 = vector.broadcast %335 : vector<4x1xf32> to vector<4x256xf32>
    %343 = vector.broadcast %341 : vector<1x256xf32> to vector<4x256xf32>
    %344 = arith.mulf %342, %343 : vector<4x256xf32>
    %345 = arith.addf %333, %344 : vector<4x256xf32>
    %c26 = arith.constant 26 : index
    %c0_74 = arith.constant 0 : index
    %c0_75 = arith.constant 0 : index
    %346 = vector.load %arg2[%c26, %c0_74, %c0_75] : memref<36x4x1xf32, #tpu.memory_space<vmem>>, vector<1x4x1xf32>
    %347 = vector.shape_cast %346 : vector<1x4x1xf32> to vector<4x1xf32>
    %348 = vector.extract_strided_slice %321 {offsets = [2, 0], sizes = [1, 256], strides = [1, 1]} : vector<8x256xf32> to vector<1x256xf32>
    %349 = vector.broadcast %347 : vector<4x1xf32> to vector<4x256xf32>
    %350 = vector.broadcast %348 : vector<1x256xf32> to vector<4x256xf32>
    %351 = arith.mulf %349, %350 : vector<4x256xf32>
    %352 = arith.addf %340, %351 : vector<4x256xf32>
    %353 = vector.extract_strided_slice %321 {offsets = [6, 0], sizes = [1, 256], strides = [1, 1]} : vector<8x256xf32> to vector<1x256xf32>
    %354 = vector.broadcast %347 : vector<4x1xf32> to vector<4x256xf32>
    %355 = vector.broadcast %353 : vector<1x256xf32> to vector<4x256xf32>
    %356 = arith.mulf %354, %355 : vector<4x256xf32>
    %357 = arith.addf %345, %356 : vector<4x256xf32>
    %c27 = arith.constant 27 : index
    %c0_76 = arith.constant 0 : index
    %c0_77 = arith.constant 0 : index
    %358 = vector.load %arg2[%c27, %c0_76, %c0_77] : memref<36x4x1xf32, #tpu.memory_space<vmem>>, vector<1x4x1xf32>
    %359 = vector.shape_cast %358 : vector<1x4x1xf32> to vector<4x1xf32>
    %360 = vector.extract_strided_slice %321 {offsets = [3, 0], sizes = [1, 256], strides = [1, 1]} : vector<8x256xf32> to vector<1x256xf32>
    %361 = vector.broadcast %359 : vector<4x1xf32> to vector<4x256xf32>
    %362 = vector.broadcast %360 : vector<1x256xf32> to vector<4x256xf32>
    %363 = arith.mulf %361, %362 : vector<4x256xf32>
    %364 = arith.addf %352, %363 : vector<4x256xf32>
    %365 = vector.extract_strided_slice %321 {offsets = [7, 0], sizes = [1, 256], strides = [1, 1]} : vector<8x256xf32> to vector<1x256xf32>
    %366 = vector.broadcast %359 : vector<4x1xf32> to vector<4x256xf32>
    %367 = vector.broadcast %365 : vector<1x256xf32> to vector<4x256xf32>
    %368 = arith.mulf %366, %367 : vector<4x256xf32>
    %369 = arith.addf %357, %368 : vector<4x256xf32>
    %c240_i32 = arith.constant 240 : i32
    %370 = tpu.dynamic_rotate %0 by %c240_i32 dim 1 : vector<8x256xf32>, i32 -> vector<8x256xf32>
    %c7_78 = arith.constant 7 : index
    %c0_79 = arith.constant 0 : index
    %c0_80 = arith.constant 0 : index
    %371 = vector.load %arg4[%c7_78, %c0_79, %c0_80] : memref<9x1x256xf32, #tpu.memory_space<vmem>>, vector<1x1x256xf32>
    %372 = vector.shape_cast %371 : vector<1x1x256xf32> to vector<1x256xf32>
    %373 = vector.broadcast %372 : vector<1x256xf32> to vector<8x256xf32>
    %374 = arith.mulf %370, %373 : vector<8x256xf32>
    %c28 = arith.constant 28 : index
    %c0_81 = arith.constant 0 : index
    %c0_82 = arith.constant 0 : index
    %375 = vector.load %arg2[%c28, %c0_81, %c0_82] : memref<36x4x1xf32, #tpu.memory_space<vmem>>, vector<1x4x1xf32>
    %376 = vector.shape_cast %375 : vector<1x4x1xf32> to vector<4x1xf32>
    %377 = vector.extract_strided_slice %374 {offsets = [0, 0], sizes = [1, 256], strides = [1, 1]} : vector<8x256xf32> to vector<1x256xf32>
    %378 = vector.broadcast %376 : vector<4x1xf32> to vector<4x256xf32>
    %379 = vector.broadcast %377 : vector<1x256xf32> to vector<4x256xf32>
    %380 = arith.mulf %378, %379 : vector<4x256xf32>
    %381 = arith.addf %364, %380 : vector<4x256xf32>
    %382 = vector.extract_strided_slice %374 {offsets = [4, 0], sizes = [1, 256], strides = [1, 1]} : vector<8x256xf32> to vector<1x256xf32>
    %383 = vector.broadcast %376 : vector<4x1xf32> to vector<4x256xf32>
    %384 = vector.broadcast %382 : vector<1x256xf32> to vector<4x256xf32>
    %385 = arith.mulf %383, %384 : vector<4x256xf32>
    %386 = arith.addf %369, %385 : vector<4x256xf32>
    %c29 = arith.constant 29 : index
    %c0_83 = arith.constant 0 : index
    %c0_84 = arith.constant 0 : index
    %387 = vector.load %arg2[%c29, %c0_83, %c0_84] : memref<36x4x1xf32, #tpu.memory_space<vmem>>, vector<1x4x1xf32>
    %388 = vector.shape_cast %387 : vector<1x4x1xf32> to vector<4x1xf32>
    %389 = vector.extract_strided_slice %374 {offsets = [1, 0], sizes = [1, 256], strides = [1, 1]} : vector<8x256xf32> to vector<1x256xf32>
    %390 = vector.broadcast %388 : vector<4x1xf32> to vector<4x256xf32>
    %391 = vector.broadcast %389 : vector<1x256xf32> to vector<4x256xf32>
    %392 = arith.mulf %390, %391 : vector<4x256xf32>
    %393 = arith.addf %381, %392 : vector<4x256xf32>
    %394 = vector.extract_strided_slice %374 {offsets = [5, 0], sizes = [1, 256], strides = [1, 1]} : vector<8x256xf32> to vector<1x256xf32>
    %395 = vector.broadcast %388 : vector<4x1xf32> to vector<4x256xf32>
    %396 = vector.broadcast %394 : vector<1x256xf32> to vector<4x256xf32>
    %397 = arith.mulf %395, %396 : vector<4x256xf32>
    %398 = arith.addf %386, %397 : vector<4x256xf32>
    %c30 = arith.constant 30 : index
    %c0_85 = arith.constant 0 : index
    %c0_86 = arith.constant 0 : index
    %399 = vector.load %arg2[%c30, %c0_85, %c0_86] : memref<36x4x1xf32, #tpu.memory_space<vmem>>, vector<1x4x1xf32>
    %400 = vector.shape_cast %399 : vector<1x4x1xf32> to vector<4x1xf32>
    %401 = vector.extract_strided_slice %374 {offsets = [2, 0], sizes = [1, 256], strides = [1, 1]} : vector<8x256xf32> to vector<1x256xf32>
    %402 = vector.broadcast %400 : vector<4x1xf32> to vector<4x256xf32>
    %403 = vector.broadcast %401 : vector<1x256xf32> to vector<4x256xf32>
    %404 = arith.mulf %402, %403 : vector<4x256xf32>
    %405 = arith.addf %393, %404 : vector<4x256xf32>
    %406 = vector.extract_strided_slice %374 {offsets = [6, 0], sizes = [1, 256], strides = [1, 1]} : vector<8x256xf32> to vector<1x256xf32>
    %407 = vector.broadcast %400 : vector<4x1xf32> to vector<4x256xf32>
    %408 = vector.broadcast %406 : vector<1x256xf32> to vector<4x256xf32>
    %409 = arith.mulf %407, %408 : vector<4x256xf32>
    %410 = arith.addf %398, %409 : vector<4x256xf32>
    %c31 = arith.constant 31 : index
    %c0_87 = arith.constant 0 : index
    %c0_88 = arith.constant 0 : index
    %411 = vector.load %arg2[%c31, %c0_87, %c0_88] : memref<36x4x1xf32, #tpu.memory_space<vmem>>, vector<1x4x1xf32>
    %412 = vector.shape_cast %411 : vector<1x4x1xf32> to vector<4x1xf32>
    %413 = vector.extract_strided_slice %374 {offsets = [3, 0], sizes = [1, 256], strides = [1, 1]} : vector<8x256xf32> to vector<1x256xf32>
    %414 = vector.broadcast %412 : vector<4x1xf32> to vector<4x256xf32>
    %415 = vector.broadcast %413 : vector<1x256xf32> to vector<4x256xf32>
    %416 = arith.mulf %414, %415 : vector<4x256xf32>
    %417 = arith.addf %405, %416 : vector<4x256xf32>
    %418 = vector.extract_strided_slice %374 {offsets = [7, 0], sizes = [1, 256], strides = [1, 1]} : vector<8x256xf32> to vector<1x256xf32>
    %419 = vector.broadcast %412 : vector<4x1xf32> to vector<4x256xf32>
    %420 = vector.broadcast %418 : vector<1x256xf32> to vector<4x256xf32>
    %421 = arith.mulf %419, %420 : vector<4x256xf32>
    %422 = arith.addf %410, %421 : vector<4x256xf32>
    %c239_i32 = arith.constant 239 : i32
    %423 = tpu.dynamic_rotate %0 by %c239_i32 dim 1 : vector<8x256xf32>, i32 -> vector<8x256xf32>
    %c8_89 = arith.constant 8 : index
    %c0_90 = arith.constant 0 : index
    %c0_91 = arith.constant 0 : index
    %424 = vector.load %arg4[%c8_89, %c0_90, %c0_91] : memref<9x1x256xf32, #tpu.memory_space<vmem>>, vector<1x1x256xf32>
    %425 = vector.shape_cast %424 : vector<1x1x256xf32> to vector<1x256xf32>
    %426 = vector.broadcast %425 : vector<1x256xf32> to vector<8x256xf32>
    %427 = arith.mulf %423, %426 : vector<8x256xf32>
    %c32 = arith.constant 32 : index
    %c0_92 = arith.constant 0 : index
    %c0_93 = arith.constant 0 : index
    %428 = vector.load %arg2[%c32, %c0_92, %c0_93] : memref<36x4x1xf32, #tpu.memory_space<vmem>>, vector<1x4x1xf32>
    %429 = vector.shape_cast %428 : vector<1x4x1xf32> to vector<4x1xf32>
    %430 = vector.extract_strided_slice %427 {offsets = [0, 0], sizes = [1, 256], strides = [1, 1]} : vector<8x256xf32> to vector<1x256xf32>
    %431 = vector.broadcast %429 : vector<4x1xf32> to vector<4x256xf32>
    %432 = vector.broadcast %430 : vector<1x256xf32> to vector<4x256xf32>
    %433 = arith.mulf %431, %432 : vector<4x256xf32>
    %434 = arith.addf %417, %433 : vector<4x256xf32>
    %435 = vector.extract_strided_slice %427 {offsets = [4, 0], sizes = [1, 256], strides = [1, 1]} : vector<8x256xf32> to vector<1x256xf32>
    %436 = vector.broadcast %429 : vector<4x1xf32> to vector<4x256xf32>
    %437 = vector.broadcast %435 : vector<1x256xf32> to vector<4x256xf32>
    %438 = arith.mulf %436, %437 : vector<4x256xf32>
    %439 = arith.addf %422, %438 : vector<4x256xf32>
    %c33 = arith.constant 33 : index
    %c0_94 = arith.constant 0 : index
    %c0_95 = arith.constant 0 : index
    %440 = vector.load %arg2[%c33, %c0_94, %c0_95] : memref<36x4x1xf32, #tpu.memory_space<vmem>>, vector<1x4x1xf32>
    %441 = vector.shape_cast %440 : vector<1x4x1xf32> to vector<4x1xf32>
    %442 = vector.extract_strided_slice %427 {offsets = [1, 0], sizes = [1, 256], strides = [1, 1]} : vector<8x256xf32> to vector<1x256xf32>
    %443 = vector.broadcast %441 : vector<4x1xf32> to vector<4x256xf32>
    %444 = vector.broadcast %442 : vector<1x256xf32> to vector<4x256xf32>
    %445 = arith.mulf %443, %444 : vector<4x256xf32>
    %446 = arith.addf %434, %445 : vector<4x256xf32>
    %447 = vector.extract_strided_slice %427 {offsets = [5, 0], sizes = [1, 256], strides = [1, 1]} : vector<8x256xf32> to vector<1x256xf32>
    %448 = vector.broadcast %441 : vector<4x1xf32> to vector<4x256xf32>
    %449 = vector.broadcast %447 : vector<1x256xf32> to vector<4x256xf32>
    %450 = arith.mulf %448, %449 : vector<4x256xf32>
    %451 = arith.addf %439, %450 : vector<4x256xf32>
    %c34 = arith.constant 34 : index
    %c0_96 = arith.constant 0 : index
    %c0_97 = arith.constant 0 : index
    %452 = vector.load %arg2[%c34, %c0_96, %c0_97] : memref<36x4x1xf32, #tpu.memory_space<vmem>>, vector<1x4x1xf32>
    %453 = vector.shape_cast %452 : vector<1x4x1xf32> to vector<4x1xf32>
    %454 = vector.extract_strided_slice %427 {offsets = [2, 0], sizes = [1, 256], strides = [1, 1]} : vector<8x256xf32> to vector<1x256xf32>
    %455 = vector.broadcast %453 : vector<4x1xf32> to vector<4x256xf32>
    %456 = vector.broadcast %454 : vector<1x256xf32> to vector<4x256xf32>
    %457 = arith.mulf %455, %456 : vector<4x256xf32>
    %458 = arith.addf %446, %457 : vector<4x256xf32>
    %459 = vector.extract_strided_slice %427 {offsets = [6, 0], sizes = [1, 256], strides = [1, 1]} : vector<8x256xf32> to vector<1x256xf32>
    %460 = vector.broadcast %453 : vector<4x1xf32> to vector<4x256xf32>
    %461 = vector.broadcast %459 : vector<1x256xf32> to vector<4x256xf32>
    %462 = arith.mulf %460, %461 : vector<4x256xf32>
    %463 = arith.addf %451, %462 : vector<4x256xf32>
    %c35 = arith.constant 35 : index
    %c0_98 = arith.constant 0 : index
    %c0_99 = arith.constant 0 : index
    %464 = vector.load %arg2[%c35, %c0_98, %c0_99] : memref<36x4x1xf32, #tpu.memory_space<vmem>>, vector<1x4x1xf32>
    %465 = vector.shape_cast %464 : vector<1x4x1xf32> to vector<4x1xf32>
    %466 = vector.extract_strided_slice %427 {offsets = [3, 0], sizes = [1, 256], strides = [1, 1]} : vector<8x256xf32> to vector<1x256xf32>
    %467 = vector.broadcast %465 : vector<4x1xf32> to vector<4x256xf32>
    %468 = vector.broadcast %466 : vector<1x256xf32> to vector<4x256xf32>
    %469 = arith.mulf %467, %468 : vector<4x256xf32>
    %470 = arith.addf %458, %469 : vector<4x256xf32>
    %471 = vector.extract_strided_slice %427 {offsets = [7, 0], sizes = [1, 256], strides = [1, 1]} : vector<8x256xf32> to vector<1x256xf32>
    %472 = vector.broadcast %465 : vector<4x1xf32> to vector<4x256xf32>
    %473 = vector.broadcast %471 : vector<1x256xf32> to vector<4x256xf32>
    %474 = arith.mulf %472, %473 : vector<4x256xf32>
    %475 = arith.addf %463, %474 : vector<4x256xf32>
    %476 = arith.addf %470, %475 : vector<4x256xf32>
    %cst = arith.constant dense<0.000000e+00> : vector<4xf32>
    %477 = vector.multi_reduction <add>, %476, %cst [1] : vector<4x256xf32> to vector<4xf32>
    %478 = vector.shape_cast %477 : vector<4xf32> to vector<4x1xf32>
    %cst_100 = arith.constant 5.120000e+02 : f32
    %479 = vector.broadcast %cst_100 : f32 to vector<4x1xf32>
    %480 = arith.divf %478, %479 : vector<4x1xf32>
    %481 = vector.broadcast %480 : vector<4x1xf32> to vector<4x256xf32>
    %482 = arith.subf %470, %481 : vector<4x256xf32>
    %483 = vector.broadcast %480 : vector<4x1xf32> to vector<4x256xf32>
    %484 = arith.subf %475, %483 : vector<4x256xf32>
    %485 = arith.mulf %482, %482 : vector<4x256xf32>
    %486 = arith.mulf %484, %484 : vector<4x256xf32>
    %487 = arith.addf %485, %486 : vector<4x256xf32>
    %cst_101 = arith.constant dense<0.000000e+00> : vector<4xf32>
    %488 = vector.multi_reduction <add>, %487, %cst_101 [1] : vector<4x256xf32> to vector<4xf32>
    %489 = vector.shape_cast %488 : vector<4xf32> to vector<4x1xf32>
    %cst_102 = arith.constant 5.120000e+02 : f32
    %490 = vector.broadcast %cst_102 : f32 to vector<4x1xf32>
    %491 = arith.divf %489, %490 : vector<4x1xf32>
    %c0_103 = arith.constant 0 : index
    %c0_104 = arith.constant 0 : index
    %492 = vector.load %arg5[%c0_103, %c0_104] : memref<4x1xf32, #tpu.memory_space<vmem>>, vector<4x1xf32>
    %cst_105 = arith.constant 9.99999974E-6 : f32
    %493 = vector.broadcast %cst_105 : f32 to vector<4x1xf32>
    %494 = arith.addf %491, %493 : vector<4x1xf32>
    %495 = math.rsqrt %494 : vector<4x1xf32>
    %496 = arith.mulf %492, %495 : vector<4x1xf32>
    %c0_106 = arith.constant 0 : index
    %c0_107 = arith.constant 0 : index
    %497 = vector.load %arg6[%c0_106, %c0_107] : memref<4x1xf32, #tpu.memory_space<vmem>>, vector<4x1xf32>
    %498 = vector.broadcast %496 : vector<4x1xf32> to vector<4x256xf32>
    %499 = arith.mulf %482, %498 : vector<4x256xf32>
    %500 = vector.broadcast %497 : vector<4x1xf32> to vector<4x256xf32>
    %501 = arith.addf %499, %500 : vector<4x256xf32>
    %cst_108 = arith.constant 0.000000e+00 : f32
    %502 = vector.broadcast %cst_108 : f32 to vector<4x256xf32>
    %503 = arith.maximumf %501, %502 : vector<4x256xf32>
    %c0_109 = arith.constant 0 : index
    %c0_110 = arith.constant 0 : index
    %c0_111 = arith.constant 0 : index
    %504 = vector.load %arg7[%c0_109, %c0_110, %c0_111] : memref<2x4x256xf32, #tpu.memory_space<vmem>>, vector<1x4x256xf32>
    %505 = vector.shape_cast %504 : vector<1x4x256xf32> to vector<4x256xf32>
    %506 = vector.shape_cast %503 : vector<4x256xf32> to vector<1x4x256xf32>
    tpu.vector_store %arg7[%c0_109, %c0_110, %c0_111], %506 {strides = array<i32>} : memref<2x4x256xf32, #tpu.memory_space<vmem>>, vector<1x4x256xf32>,
    %507 = vector.broadcast %496 : vector<4x1xf32> to vector<4x256xf32>
    %508 = arith.mulf %484, %507 : vector<4x256xf32>
    %509 = vector.broadcast %497 : vector<4x1xf32> to vector<4x256xf32>
    %510 = arith.addf %508, %509 : vector<4x256xf32>
    %cst_112 = arith.constant 0.000000e+00 : f32
    %511 = vector.broadcast %cst_112 : f32 to vector<4x256xf32>
    %512 = arith.maximumf %510, %511 : vector<4x256xf32>
    %c1_113 = arith.constant 1 : index
    %c0_114 = arith.constant 0 : index
    %c0_115 = arith.constant 0 : index
    %513 = vector.load %arg7[%c1_113, %c0_114, %c0_115] : memref<2x4x256xf32, #tpu.memory_space<vmem>>, vector<1x4x256xf32>
    %514 = vector.shape_cast %513 : vector<1x4x256xf32> to vector<4x256xf32>
    %515 = vector.shape_cast %512 : vector<4x256xf32> to vector<1x4x256xf32>
    tpu.vector_store %arg7[%c1_113, %c0_114, %c0_115], %515 {strides = array<i32>} : memref<2x4x256xf32, #tpu.memory_space<vmem>>, vector<1x4x256xf32>,
    return
  }
  func.func @transform_0(%arg0: i32) -> (i32, i32) {
    %c0_i32 = arith.constant 0 : i32
    %c0_i32_0 = arith.constant 0 : i32
    %c0_i32_1 = arith.constant 0 : i32
    return %c0_i32, %c0_i32_0 : i32, i32
  }
  func.func @transform_1(%arg0: i32) -> (i32, i32, i32) {
    %c0_i32 = arith.constant 0 : i32
    %c0_i32_0 = arith.constant 0 : i32
    %c0_i32_1 = arith.constant 0 : i32
    %c0_i32_2 = arith.constant 0 : i32
    return %c0_i32, %c0_i32_0, %c0_i32_1 : i32, i32, i32
  }
  func.func @transform_2(%arg0: i32) -> (i32, i32) {
    %c0_i32 = arith.constant 0 : i32
    %c0_i32_0 = arith.constant 0 : i32
    %c0_i32_1 = arith.constant 0 : i32
    return %c0_i32, %c0_i32_0 : i32, i32
  }
  func.func @transform_3(%arg0: i32) -> (i32, i32, i32) {
    %c0_i32 = arith.constant 0 : i32
    %c0_i32_0 = arith.constant 0 : i32
    %c0_i32_1 = arith.constant 0 : i32
    %c0_i32_2 = arith.constant 0 : i32
    return %c0_i32, %c0_i32_0, %c0_i32_1 : i32, i32, i32
  }
  func.func @transform_4(%arg0: i32) -> (i32, i32) {
    %c0_i32 = arith.constant 0 : i32
    %c0_i32_0 = arith.constant 0 : i32
    %c0_i32_1 = arith.constant 0 : i32
    return %c0_i32, %c0_i32_0 : i32, i32
  }
  func.func @transform_5(%arg0: i32) -> (i32, i32) {
    %c0_i32 = arith.constant 0 : i32
    %c0_i32_0 = arith.constant 0 : i32
    %c0_i32_1 = arith.constant 0 : i32
    return %c0_i32, %c0_i32_0 : i32, i32
  }
  func.func @transform_6(%arg0: i32) -> (i32, i32, i32) {
    %c0_i32 = arith.constant 0 : i32
    %c0_i32_0 = arith.constant 0 : i32
    %c0_i32_1 = arith.constant 0 : i32
    %c0_i32_2 = arith.constant 0 : i32
    return %c0_i32, %c0_i32_0, %c0_i32_1 : i32, i32, i32
  }
}

</mosaic_0001>

<bundles_post_ra>
// kernel: sameblock2d_forward.1
= control target key start
LH: loop header
LB: loop body
LE: loop exit
PB: predicated region body
PF: predicated region fallthrough
CT: control target
= control target key end

     0   :  { %v1447_v0 = vmov 0   ;;  %s1448_s25 = smov 17   ;;  %s1449_s12 = smov 16   ;;  %v35_v40 = vlaneseq  ;;  %vm1325_vm8 = vcmask 1043456   ;;  %s2159_s1 = inlined_call_operand.vmem [shape: f32[36,4,1], index: 1, kind: input, shape index: {}]   ;;  %s2160_s0 = inlined_call_operand.vmem [shape: f32[8,256], index: 0, kind: input, shape index: {}]   ;;  %s2161_s2 = inlined_call_operand.vmem [shape: f32[4,1], index: 2, kind: input, shape index: {}]   ;;  %s2162_s3 = inlined_call_operand.vmem [shape: f32[9,1,256], index: 3, kind: input, shape index: {}]   ;;  %s2163_s5 = inlined_call_operand.vmem [shape: f32[4,1], index: 5, kind: input, shape index: {}]   ;;  %s2164_s4 = inlined_call_operand.vmem [shape: f32[4,1], index: 4, kind: input, shape index: {}]   ;;  %s2165_s6 = inlined_call_operand.vmem [shape: f32[2,4,256], index: 6, kind: output, shape index: {}]  }
   0x1   :  { %1443 = vset.pattern.permute.xlu0 %v1447_v0  ;;  %v54_v1 = vld [vmem:[%s2159_s1] sm:$0xf]  ;;  %1444 = vset.pattern.permute.xlu1 %v1447_v0  ;;  %v1506_v4 = vld [vmem:[%s2160_s0 + $0x8] sm:$0xff]  ;;  %v1391_v5 = vld [vmem:[%s2159_s1 + $0x4] sm:$0xf]  ;;  %s1450_s21 = smov 15  }
   0x2   :  { %v1497_v2 = vld [vmem:[%s2160_s0] sm:$0xff]  ;;  %57 = vperm.xlu0 %1443, %v54_v1   ;;  %v1392_v6 = vld [vmem:[%s2159_s1 + $0x8] sm:$0xf]  ;;  %v1393_v7 = vld [vmem:[%s2159_s1 + $0xc] sm:$0xf]  ;;  %s1451_s30 = smov 1  }
   0x3   :  { %31 = vrot.lane.b32.xlu1 %v1497_v2, %s1448_s25  ;;  %v25_v3 = vld [vmem:[%s2161_s2] sm:$0xf]  ;;  %v1395_v8 = vld [vmem:[%s2159_s1 + $0x10] sm:$0xf]  ;;  %v1396_v9 = vld [vmem:[%s2159_s1 + $0x14] sm:$0xf] }
   0x4   :  { %v1397_v10 = vld [vmem:[%s2159_s1 + $0x18] sm:$0xf]  ;;  %v1398_v11 = vld [vmem:[%s2159_s1 + $0x1c] sm:$0xf]  ;;  %v1400_v12 = vld [vmem:[%s2159_s1 + $0x20] sm:$0xf] }
   0x5   :  { %v1401_v13 = vld [vmem:[%s2159_s1 + $0x24] sm:$0xf]  ;;  %v1402_v14 = vld [vmem:[%s2159_s1 + $0x28] sm:$0xf]  ;;  %v1403_v15 = vld [vmem:[%s2159_s1 + $0x2c] sm:$0xf] }
   0x6   :  { %28 = vperm.xlu0 %1443, %v25_v3   ;;  %v1405_v16 = vld [vmem:[%s2159_s1 + $0x30] sm:$0xf]  ;;  %v1406_v17 = vld [vmem:[%s2159_s1 + $0x34] sm:$0xf]  ;;  %v1407_v18 = vld [vmem:[%s2159_s1 + $0x38] sm:$0xf] }
   0x7   :  { %33 = vrot.lane.b32.xlu1 %v1506_v4, %s1448_s25  ;;  %v1408_v19 = vld [vmem:[%s2159_s1 + $0x3c] sm:$0xf]  ;;  %v1409_v20 = vld [vmem:[%s2159_s1 + $0x40] sm:$0xf]  ;;  %v1410_v21 = vld [vmem:[%s2159_s1 + $0x44] sm:$0xf] }
   0x8   :  { %v1411_v22 = vld [vmem:[%s2159_s1 + $0x48] sm:$0xf]  ;;  %v1412_v23 = vld [vmem:[%s2159_s1 + $0x4c] sm:$0xf]  ;;  %v1414_v24 = vld [vmem:[%s2159_s1 + $0x50] sm:$0xf] }
   0x9   :  { %v1415_v25 = vld [vmem:[%s2159_s1 + $0x54] sm:$0xf]  ;;  %v1416_v26 = vld [vmem:[%s2159_s1 + $0x58] sm:$0xf]  ;;  %v1417_v27 = vld [vmem:[%s2159_s1 + $0x5c] sm:$0xf] }
   0xa   :  { %88 = vperm.xlu0 %1443, %v1391_v5   ;;  %v1419_v28 = vld [vmem:[%s2159_s1 + $0x60] sm:$0xf]  ;;  %v1420_v29 = vld [vmem:[%s2159_s1 + $0x64] sm:$0xf]  ;;  %v1421_v30 = vld [vmem:[%s2159_s1 + $0x68] sm:$0xf] }
   0xb   :  { %119 = vperm.xlu1 %1444, %v1392_v6   ;;  %v1422_v31 = vld [vmem:[%s2159_s1 + $0x6c] sm:$0xf]  ;;  %v1424_v32 = vld [vmem:[%s2159_s1 + $0x70] sm:$0xf]  ;;  %s1454_s13 = smov 112   ;;  %s1455_s22 = smov 111  }
   0xc   :  { %v1425_v33 = vld [vmem:[%s2159_s1 + $0x74] sm:$0xf]  ;;  %v1426_v34 = vld [vmem:[%s2159_s1 + $0x78] sm:$0xf]  ;;  %v1427_v35 = vld [vmem:[%s2159_s1 + $0x7c] sm:$0xf] }
   0xd   :  { %v1429_v36 = vld [vmem:[%s2159_s1 + $0x80] sm:$0xf]  ;;  %v1430_v37 = vld [vmem:[%s2159_s1 + $0x84] sm:$0xf]  ;;  %v1431_v38 = vld [vmem:[%s2159_s1 + $0x88] sm:$0xf] }
   0xe   :  { %150 = vperm.xlu0 %1443, %v1393_v7   ;;  %v1432_v39 = vld [vmem:[%s2159_s1 + $0x8c] sm:$0xf]  ;;  %v43_v42 = vshrl.u32 %v35_v40, 7  ;;  %v1628_v43 = vand.u32 127, %v35_v40  ;;  %v40_v46 = vld [vmem:[%s2162_s3] sm:$0x3] }
   0xf   :  { %203 = vperm.xlu1 %1444, %v1395_v8   ;;  %v1649_v56 = vld [vmem:[%s2162_s3 + $0x2] sm:$0x3] }
  0x10   :  { %v1630_v44 = vsub.s32 0, %v43_v42  ;;  %v1632_v45 = vsub.s32 1, %v43_v42  ;;  %vm37_vm0 = vcmp.lt.s32.totalorder %v1628_v43, 17  ;;  %v1644_v54 = vsub.s32 4, %v43_v42 }
  0x11   :  { %v1651_v57 = vsub.s32 5, %v43_v42  ;;  %v1653_v58 = vsub.s32 2, %v43_v42  ;;  %v1655_v59 = vsub.s32 6, %v43_v42  ;;  %v1665_v1 = vsub.s32 3, %v43_v42 }
  0x12   :  { %177 = vrot.lane.b32.xlu0 %v1497_v2, %s1449_s12  ;;  %v45_v48 = vrot.slane %v40_v46, %v1630_v44  ;;  %v49_v49 = vrot.slane %v40_v46, %v1632_v45  ;;  %v1667_v3 = vsub.s32 7, %v43_v42  ;;  %v190_v5 = vrot.slane %v1649_v56, %v1630_v44  ;;  %v1701_v46 = vld [vmem:[%s2162_s3 + $0x4] sm:$0x3] }
  0x13   :  { %179 = vrot.lane.b32.xlu1 %v1506_v4, %s1449_s12  ;;  %v194_v6 = vrot.slane %v1649_v56, %v1632_v45  ;;  %vm181_vm1 = vcmp.lt.s32.totalorder %v1628_v43, 16  ;;  %vm327_vm2 = vcmp.lt.s32.totalorder %v1628_v43, 15  ;;  %vm473_vm3 = vcmp.lt.s32.totalorder %v1628_v43, 1 }
  0x14   :  { %vm743_vm4 = vcmp.lt.s32.totalorder %v1628_v43, 127  ;;  %vm889_vm5 = vcmp.lt.s32.totalorder %v1628_v43, 113  ;;  %vm1035_vm6 = vcmp.lt.s32.totalorder %v1628_v43, 112  ;;  %vm1181_vm7 = vcmp.lt.s32.totalorder %v1628_v43, 111 }
  0x16   :  { %234 = vperm.xlu0 %1443, %v1396_v9  }
  0x17   :  { %265 = vperm.xlu1 %1444, %v1397_v10  }
  0x1a   :  { %296 = vperm.xlu0 %1443, %v1398_v11  }
  0x1b   :  { %349 = vperm.xlu1 %1444, %v1400_v12  }
  0x1e   :  { %323 = vrot.lane.b32.xlu0 %v1497_v2, %s1450_s21 }
  0x1f   :  { %325 = vrot.lane.b32.xlu1 %v1506_v4, %s1450_s21  ;;  %s1452_s21 = smov 127  }
  0x22   :  { %380 = vperm.xlu0 %1443, %v1401_v13  }
  0x23   :  { %411 = vperm.xlu1 %1444, %v1402_v14  }
  0x26   :  { %442 = vperm.xlu0 %1443, %v1403_v15  }
  0x27   :  { %495 = vperm.xlu1 %1444, %v1405_v16  }
  0x2a   :  { %469 = vrot.lane.b32.xlu0 %v1497_v2, %s1451_s30 }
  0x2b   :  { %471 = vrot.lane.b32.xlu1 %v1506_v4, %s1451_s30  ;;  %s1453_s30 = smov 113  }
  0x2e   :  { %526 = vperm.xlu0 %1443, %v1406_v17  }
  0x2f   :  { %557 = vperm.xlu1 %1444, %v1407_v18  }
  0x32   :  { %588 = vperm.xlu0 %1443, %v1408_v19  }
  0x33   :  { %619 = vperm.xlu1 %1444, %v1409_v20  }
  0x36   :  { %650 = vperm.xlu0 %1443, %v1410_v21  }
  0x37   :  { %681 = vperm.xlu1 %1444, %v1411_v22  }
  0x3a   :  { %712 = vperm.xlu0 %1443, %v1412_v23  }
  0x3b   :  { %765 = vperm.xlu1 %1444, %v1414_v24  }
  0x3e   :  { %739 = vrot.lane.b32.xlu0 %v1497_v2, %s1452_s21 }
  0x3f   :  { %741 = vrot.lane.b32.xlu1 %v1506_v4, %s1452_s21 }
  0x42   :  { %796 = vperm.xlu0 %1443, %v1415_v25  }
  0x43   :  { %827 = vperm.xlu1 %1444, %v1416_v26  }
  0x46   :  { %858 = vperm.xlu0 %1443, %v1417_v27  }
  0x47   :  { %911 = vperm.xlu1 %1444, %v1419_v28  }
  0x4a   :  { %885 = vrot.lane.b32.xlu0 %v1497_v2, %s1453_s30 }
  0x4b   :  { %887 = vrot.lane.b32.xlu1 %v1506_v4, %s1453_s30 }
  0x4e   :  { %942 = vperm.xlu0 %1443, %v1420_v29  }
  0x4f   :  { %973 = vperm.xlu1 %1444, %v1421_v30  }
  0x52   :  { %1004 = vperm.xlu0 %1443, %v1422_v31  }
  0x53   :  { %1057 = vperm.xlu1 %1444, %v1424_v32  }
  0x56   :  { %1031 = vrot.lane.b32.xlu0 %v1497_v2, %s1454_s13 }
  0x57   :  { %1033 = vrot.lane.b32.xlu1 %v1506_v4, %s1454_s13 }
  0x5a   :  { %1088 = vperm.xlu0 %1443, %v1425_v33  }
  0x5b   :  { %1119 = vperm.xlu1 %1444, %v1426_v34  }
  0x5e   :  { %1150 = vperm.xlu0 %1443, %v1427_v35  }
  0x5f   :  { %1203 = vperm.xlu1 %1444, %v1429_v36  }
  0x62   :  { %1177 = vrot.lane.b32.xlu0 %v1497_v2, %s1455_s22 }
  0x63   :  { %1179 = vrot.lane.b32.xlu1 %v1506_v4, %s1455_s22 }
  0x66   :  { %1234 = vperm.xlu0 %1443, %v1430_v37  }
  0x67   :  { %1265 = vperm.xlu1 %1444, %v1431_v38  }
  0x6a   :  { %1296 = vperm.xlu0 %1443, %v1432_v39  }
  0x75   :  { %v32_v41 = vpop.permute.xlu1 %31 }
  0x79   :  { %v34_v47 = vpop.permute.xlu1 %33 }
  0x7a   :  { %v38_v50 = vsel %vm37_vm0, %v32_v41, %v34_v47  ;;  %v39_v51 = vsel %vm37_vm0, %v34_v47, %v32_v41  ;;  %v1706_v47 = vld [vmem:[%s2162_s3 + $0x6] sm:$0x3] }
  0x7b   :  { %v1640_v52 = vmul.f32 %v45_v48, %v39_v51  ;;  %v1642_v53 = vmul.f32 %v49_v49, %v38_v50 }
  0x7d   :  { %v63_v60 = vrot.slane %v1640_v52, %v1630_v44  ;;  %v67_v61 = vrot.slane %v1642_v53, %v1630_v44  ;;  %v75_v62 = vrot.slane %v1640_v52, %v1644_v54  ;;  %v79_v63 = vrot.slane %v1642_v53, %v1644_v54 }
  0x7e   :  { %v94_v11 = vrot.slane %v1640_v52, %v1632_v45  ;;  %v98_v12 = vrot.slane %v1642_v53, %v1632_v45  ;;  %v106_v13 = vrot.slane %v1640_v52, %v1651_v57  ;;  %v110_v14 = vrot.slane %v1642_v53, %v1651_v57 }
  0x7f   :  { %v125_v25 = vrot.slane %v1640_v52, %v1653_v58  ;;  %v129_v26 = vrot.slane %v1642_v53, %v1653_v58  ;;  %v137_v27 = vrot.slane %v1640_v52, %v1655_v59  ;;  %v141_v28 = vrot.slane %v1642_v53, %v1655_v59 }
  0x80   :  { %v156_v39 = vrot.slane %v1640_v52, %v1665_v1  ;;  %v160_v40 = vrot.slane %v1642_v53, %v1665_v1  ;;  %v168_v41 = vrot.slane %v1640_v52, %v1667_v3  ;;  %v172_v42 = vrot.slane %v1642_v53, %v1667_v3 }
  0x81   :  { %v58_v55 = vpop.permute.xlu0 %57 }
  0x82   :  { %v68_v7 = vmul.f32 %v63_v60, %v58_v55  ;;  %v69_v8 = vmul.f32 %v67_v61, %v58_v55  ;;  %v80_v9 = vmul.f32 %v75_v62, %v58_v55  ;;  %v81_v10 = vmul.f32 %v79_v63, %v58_v55 }
  0x83   :  { %v336_v62 = vrot.slane %v1701_v46, %v1630_v44  ;;  %v340_v63 = vrot.slane %v1701_v46, %v1632_v45 }
  0x85   :  { %v29_v0 = vpop.permute.xlu0 %28 }
  0x86   :  { %v70_v15 = vadd.f32 %v68_v7, %v29_v0  ;;  %v71_v16 = vadd.f32 %v69_v8, %v29_v0  ;;  %v82_v17 = vadd.f32 %v80_v9, %v29_v0  ;;  %v83_v18 = vadd.f32 %v81_v10, %v29_v0 }
  0x87   :  { %v482_v0 = vrot.slane %v1706_v47, %v1630_v44  ;;  %v486_v7 = vrot.slane %v1706_v47, %v1632_v45  ;;  %v629_v10 = vrot.slane %v1506_v4, %v1630_v44 }
  0x89   :  { %v89_v19 = vpop.permute.xlu0 %88 }
  0x8a   :  { %v120_v20 = vpop.permute.xlu1 %119  ;;  %v99_v21 = vmul.f32 %v94_v11, %v89_v19  ;;  %v100_v22 = vmul.f32 %v98_v12, %v89_v19  ;;  %v111_v23 = vmul.f32 %v106_v13, %v89_v19  ;;  %v112_v24 = vmul.f32 %v110_v14, %v89_v19 }
  0x8b   :  { %v130_v33 = vmul.f32 %v125_v25, %v120_v20  ;;  %v131_v34 = vmul.f32 %v129_v26, %v120_v20  ;;  %v142_v35 = vmul.f32 %v137_v27, %v120_v20  ;;  %v143_v36 = vmul.f32 %v141_v28, %v120_v20 }
  0x8c   :  { %v101_v29 = vadd.f32 %v99_v21, %v70_v15  ;;  %v102_v30 = vadd.f32 %v100_v22, %v71_v16  ;;  %v113_v31 = vadd.f32 %v111_v23, %v82_v17  ;;  %v114_v32 = vadd.f32 %v112_v24, %v83_v18 }
  0x8d   :  { %v151_v37 = vpop.permute.xlu0 %150  ;;  %v641_v11 = vrot.slane %v1506_v4, %v1644_v54  ;;  %v625_v14 = vrot.slane %v1497_v2, %v1630_v44  ;;  %v637_v15 = vrot.slane %v1497_v2, %v1644_v54 }
  0x8e   :  { %v204_v38 = vpop.permute.xlu1 %203  ;;  %v132_v48 = vadd.f32 %v130_v33, %v101_v29  ;;  %v133_v49 = vadd.f32 %v131_v34, %v102_v30  ;;  %v144_v50 = vadd.f32 %v142_v35, %v113_v31  ;;  %v145_v51 = vadd.f32 %v143_v36, %v114_v32 }
  0x8f   :  { %v161_v55 = vmul.f32 %v156_v39, %v151_v37  ;;  %v162_v56 = vmul.f32 %v160_v40, %v151_v37  ;;  %v173_v52 = vmul.f32 %v168_v41, %v151_v37  ;;  %v174_v60 = vmul.f32 %v172_v42, %v151_v37 }
  0x91   :  { %v178_v61 = vpop.permute.xlu0 %177  ;;  %v163_v16 = vadd.f32 %v161_v55, %v132_v48  ;;  %v164_v17 = vadd.f32 %v162_v56, %v133_v49  ;;  %v175_v18 = vadd.f32 %v173_v52, %v144_v50  ;;  %v176_v19 = vadd.f32 %v174_v60, %v145_v51 }
  0x92   :  { %v180_v53 = vpop.permute.xlu1 %179  ;;  %v660_v60 = vrot.slane %v1506_v4, %v1632_v45 }
  0x93   :  { %v182_v8 = vsel %vm181_vm1, %v178_v61, %v180_v53  ;;  %v183_v9 = vsel %vm181_vm1, %v180_v53, %v178_v61  ;;  %v672_v61 = vrot.slane %v1506_v4, %v1651_v57  ;;  %v656_v53 = vrot.slane %v1497_v2, %v1632_v45 }
  0x94   :  { %v1724_v12 = vmul.f32 %v190_v5, %v183_v9  ;;  %v1726_v13 = vmul.f32 %v194_v6, %v182_v8  ;;  %v668_v8 = vrot.slane %v1497_v2, %v1651_v57 }
  0x95   :  { %v235_v20 = vpop.permute.xlu0 %234 }
  0x96   :  { %v209_v21 = vrot.slane %v1724_v12, %v1630_v44  ;;  %v213_v5 = vrot.slane %v1726_v13, %v1630_v44  ;;  %v221_v6 = vrot.slane %v1724_v12, %v1644_v54  ;;  %v225_v22 = vrot.slane %v1726_v13, %v1644_v54  ;;  %v266_v23 = vpop.permute.xlu1 %265 }
  0x97   :  { %v240_v24 = vrot.slane %v1724_v12, %v1632_v45  ;;  %v244_v25 = vrot.slane %v1726_v13, %v1632_v45  ;;  %v252_v26 = vrot.slane %v1724_v12, %v1651_v57  ;;  %v256_v27 = vrot.slane %v1726_v13, %v1651_v57 }
  0x98   :  { %v214_v28 = vmul.f32 %v209_v21, %v204_v38  ;;  %v215_v29 = vmul.f32 %v213_v5, %v204_v38  ;;  %v226_v30 = vmul.f32 %v221_v6, %v204_v38  ;;  %v227_v31 = vmul.f32 %v225_v22, %v204_v38 }
  0x99   :  { %v245_v32 = vmul.f32 %v240_v24, %v235_v20  ;;  %v246_v33 = vmul.f32 %v244_v25, %v235_v20  ;;  %v257_v34 = vmul.f32 %v252_v26, %v235_v20  ;;  %v258_v35 = vmul.f32 %v256_v27, %v235_v20  ;;  %v297_v41 = vpop.permute.xlu0 %296 }
  0x9a   :  { %v216_v36 = vadd.f32 %v214_v28, %v163_v16  ;;  %v217_v37 = vadd.f32 %v215_v29, %v164_v17  ;;  %v228_v39 = vadd.f32 %v226_v30, %v175_v18  ;;  %v229_v40 = vadd.f32 %v227_v31, %v176_v19  ;;  %v350_v42 = vpop.permute.xlu1 %349 }
  0x9b   :  { %v271_v48 = vrot.slane %v1724_v12, %v1653_v58  ;;  %v275_v49 = vrot.slane %v1726_v13, %v1653_v58  ;;  %v283_v50 = vrot.slane %v1724_v12, %v1655_v59  ;;  %v287_v38 = vrot.slane %v1726_v13, %v1655_v59 }
  0x9c   :  { %v247_v51 = vadd.f32 %v245_v32, %v216_v36  ;;  %v248_v55 = vadd.f32 %v246_v33, %v217_v37  ;;  %v259_v56 = vadd.f32 %v257_v34, %v228_v39  ;;  %v260_v52 = vadd.f32 %v258_v35, %v229_v40 }
  0x9d   :  { %v276_v9 = vmul.f32 %v271_v48, %v266_v23  ;;  %v277_v16 = vmul.f32 %v275_v49, %v266_v23  ;;  %v288_v17 = vmul.f32 %v283_v50, %v266_v23  ;;  %v289_v18 = vmul.f32 %v287_v38, %v266_v23  ;;  %v324_v19 = vpop.permute.xlu0 %323 }
  0x9e   :  { %v326_v20 = vpop.permute.xlu1 %325  ;;  %v302_v21 = vrot.slane %v1724_v12, %v1665_v1  ;;  %v306_v5 = vrot.slane %v1726_v13, %v1665_v1  ;;  %v314_v6 = vrot.slane %v1724_v12, %v1667_v3  ;;  %v318_v22 = vrot.slane %v1726_v13, %v1667_v3 }
  0x9f   :  { %v278_v24 = vadd.f32 %v276_v9, %v247_v51  ;;  %v279_v25 = vadd.f32 %v277_v16, %v248_v55  ;;  %v290_v26 = vadd.f32 %v288_v17, %v259_v56  ;;  %v291_v27 = vadd.f32 %v289_v18, %v260_v52 }
  0xa0   :  { %v328_v23 = vsel %vm327_vm2, %v324_v19, %v326_v20  ;;  %v329_v28 = vsel %vm327_vm2, %v326_v20, %v324_v19  ;;  %v691_v29 = vrot.slane %v1506_v4, %v1653_v58  ;;  %v703_v30 = vrot.slane %v1506_v4, %v1655_v59 }
  0xa1   :  { %v307_v12 = vmul.f32 %v302_v21, %v297_v41  ;;  %v308_v31 = vmul.f32 %v306_v5, %v297_v41  ;;  %v319_v32 = vmul.f32 %v314_v6, %v297_v41  ;;  %v320_v13 = vmul.f32 %v318_v22, %v297_v41  ;;  %v381_v33 = vpop.permute.xlu0 %380 }
  0xa2   :  { %v412_v34 = vpop.permute.xlu1 %411  ;;  %v1784_v35 = vmul.f32 %v336_v62, %v329_v28  ;;  %v1789_v36 = vmul.f32 %v340_v63, %v328_v23  ;;  %v687_v37 = vrot.slane %v1497_v2, %v1653_v58  ;;  %v699_v39 = vrot.slane %v1497_v2, %v1655_v59 }
  0xa3   :  { %v309_v40 = vadd.f32 %v307_v12, %v278_v24  ;;  %v310_v41 = vadd.f32 %v308_v31, %v279_v25  ;;  %v321_v48 = vadd.f32 %v319_v32, %v290_v26  ;;  %v322_v49 = vadd.f32 %v320_v13, %v291_v27 }
  0xa4   :  { %v355_v50 = vrot.slane %v1784_v35, %v1630_v44  ;;  %v359_v62 = vrot.slane %v1789_v36, %v1630_v44  ;;  %v367_v46 = vrot.slane %v1784_v35, %v1644_v54  ;;  %v371_v63 = vrot.slane %v1789_v36, %v1644_v54 }
  0xa5   :  { %v386_v38 = vrot.slane %v1784_v35, %v1632_v45  ;;  %v390_v51 = vrot.slane %v1789_v36, %v1632_v45  ;;  %v398_v55 = vrot.slane %v1784_v35, %v1651_v57  ;;  %v402_v56 = vrot.slane %v1789_v36, %v1651_v57  ;;  %v443_v52 = vpop.permute.xlu0 %442 }
  0xa6   :  { %v1812_v9 = vpop.permute.xlu1 %495  ;;  %v360_v16 = vmul.f32 %v355_v50, %v350_v42  ;;  %v361_v17 = vmul.f32 %v359_v62, %v350_v42  ;;  %v372_v18 = vmul.f32 %v367_v46, %v350_v42  ;;  %v373_v19 = vmul.f32 %v371_v63, %v350_v42 }
  0xa7   :  { %v391_v20 = vmul.f32 %v386_v38, %v381_v33  ;;  %v392_v21 = vmul.f32 %v390_v51, %v381_v33  ;;  %v403_v5 = vmul.f32 %v398_v55, %v381_v33  ;;  %v404_v6 = vmul.f32 %v402_v56, %v381_v33 }
  0xa8   :  { %v362_v22 = vadd.f32 %v360_v16, %v309_v40  ;;  %v363_v24 = vadd.f32 %v361_v17, %v310_v41  ;;  %v374_v25 = vadd.f32 %v372_v18, %v321_v48  ;;  %v375_v26 = vadd.f32 %v373_v19, %v322_v49 }
  0xa9   :  { %v417_v27 = vrot.slane %v1784_v35, %v1653_v58  ;;  %v421_v23 = vrot.slane %v1789_v36, %v1653_v58  ;;  %v429_v28 = vrot.slane %v1784_v35, %v1655_v59  ;;  %v433_v42 = vrot.slane %v1789_v36, %v1655_v59  ;;  %v470_v12 = vpop.permute.xlu0 %469 }
  0xaa   :  { %v472_v31 = vpop.permute.xlu1 %471  ;;  %v393_v32 = vadd.f32 %v391_v20, %v362_v22  ;;  %v394_v13 = vadd.f32 %v392_v21, %v363_v24  ;;  %v405_v33 = vadd.f32 %v403_v5, %v374_v25  ;;  %v406_v40 = vadd.f32 %v404_v6, %v375_v26 }
  0xab   :  { %v422_v41 = vmul.f32 %v417_v27, %v412_v34  ;;  %v423_v48 = vmul.f32 %v421_v23, %v412_v34  ;;  %v722_v49 = vrot.slane %v1506_v4, %v1665_v1  ;;  %v734_v50 = vrot.slane %v1506_v4, %v1667_v3 }
  0xac   :  { %v434_v62 = vmul.f32 %v429_v28, %v412_v34  ;;  %v435_v46 = vmul.f32 %v433_v42, %v412_v34  ;;  %v718_v63 = vrot.slane %v1497_v2, %v1665_v1  ;;  %v730_v38 = vrot.slane %v1497_v2, %v1667_v3  ;;  %v1837_v34 = vld [vmem:[%s2162_s3 + $0xa] sm:$0x3] }
  0xad   :  { %v424_v51 = vadd.f32 %v422_v41, %v393_v32  ;;  %v425_v55 = vadd.f32 %v423_v48, %v394_v13  ;;  %v448_v56 = vrot.slane %v1784_v35, %v1665_v1  ;;  %v452_v16 = vrot.slane %v1789_v36, %v1665_v1  ;;  %v527_v17 = vpop.permute.xlu0 %526 }
  0xae   :  { %v558_v18 = vpop.permute.xlu1 %557  ;;  %v436_v19 = vadd.f32 %v434_v62, %v405_v33  ;;  %v437_v20 = vadd.f32 %v435_v46, %v406_v40  ;;  %v460_v21 = vrot.slane %v1784_v35, %v1667_v3  ;;  %v464_v5 = vrot.slane %v1789_v36, %v1667_v3 }
  0xaf   :  { %v453_v6 = vmul.f32 %v448_v56, %v443_v52  ;;  %v454_v22 = vmul.f32 %v452_v16, %v443_v52  ;;  %v474_v24 = vsel %vm473_vm3, %v470_v12, %v472_v31  ;;  %v475_v25 = vsel %vm473_vm3, %v472_v31, %v470_v12 }
  0xb0   :  { %v465_v26 = vmul.f32 %v460_v21, %v443_v52  ;;  %v466_v27 = vmul.f32 %v464_v5, %v443_v52  ;;  %v489_v36 = vmul.f32 %v482_v0, %v475_v25  ;;  %v490_v32 = vmul.f32 %v486_v7, %v474_v24 }
  0xb1   :  { %v455_v35 = vadd.f32 %v453_v6, %v424_v51  ;;  %v456_v42 = vadd.f32 %v454_v22, %v425_v55  ;;  %v589_v13 = vpop.permute.xlu0 %588  ;;  %v2166_v2 = vrot.slane %v1837_v34, %v1630_v44  ;;  %v2167_v4 = vrot.slane %v1837_v34, %v1632_v45 }
  0xb2   :  { %v620_v12 = vpop.permute.xlu1 %619  ;;  %v467_v31 = vadd.f32 %v465_v26, %v436_v19  ;;  %v468_v52 = vadd.f32 %v466_v27, %v437_v20  ;;  %v501_v0 = vrot.slane %v489_v36, %v1630_v44  ;;  %v505_v41 = vrot.slane %v490_v32, %v1630_v44 }
  0xb3   :  { %v1860_v33 = vmul.f32 %v625_v14, %v620_v12  ;;  %v1865_v40 = vmul.f32 %v629_v10, %v620_v12  ;;  %v513_v47 = vrot.slane %v489_v36, %v1644_v54  ;;  %v517_v7 = vrot.slane %v490_v32, %v1644_v54 }
  0xb4   :  { %v532_v48 = vrot.slane %v489_v36, %v1632_v45  ;;  %v536_v62 = vrot.slane %v490_v32, %v1632_v45  ;;  %v544_v14 = vrot.slane %v489_v36, %v1651_v57  ;;  %v548_v46 = vrot.slane %v490_v32, %v1651_v57 }
  0xb5   :  { %v506_v51 = vmul.f32 %v501_v0, %v1812_v9  ;;  %v507_v10 = vmul.f32 %v505_v41, %v1812_v9  ;;  %v518_v55 = vmul.f32 %v513_v47, %v1812_v9  ;;  %v519_v56 = vmul.f32 %v517_v7, %v1812_v9  ;;  %v651_v16 = vpop.permute.xlu0 %650 }
  0xb6   :  { %v682_v19 = vpop.permute.xlu1 %681  ;;  %v537_v20 = vmul.f32 %v532_v48, %v527_v17  ;;  %v538_v21 = vmul.f32 %v536_v62, %v527_v17  ;;  %v549_v5 = vmul.f32 %v544_v14, %v527_v17  ;;  %v550_v6 = vmul.f32 %v548_v46, %v527_v17 }
  0xb7   :  { %v508_v22 = vadd.f32 %v506_v51, %v455_v35  ;;  %v509_v24 = vadd.f32 %v507_v10, %v456_v42  ;;  %v520_v25 = vadd.f32 %v518_v55, %v467_v31  ;;  %v521_v26 = vadd.f32 %v519_v56, %v468_v52 }
  0xb8   :  { %v563_v27 = vrot.slane %v489_v36, %v1653_v58  ;;  %v567_v0 = vrot.slane %v490_v32, %v1653_v58  ;;  %v575_v41 = vrot.slane %v489_v36, %v1655_v59  ;;  %v579_v47 = vrot.slane %v490_v32, %v1655_v59 }
  0xb9   :  { %v539_v28 = vadd.f32 %v537_v20, %v508_v22  ;;  %v540_v9 = vadd.f32 %v538_v21, %v509_v24  ;;  %v551_v7 = vadd.f32 %v549_v5, %v520_v25  ;;  %v552_v23 = vadd.f32 %v550_v6, %v521_v26  ;;  %v713_v48 = vpop.permute.xlu0 %712 }
  0xba   :  { %v1883_v62 = vpop.permute.xlu1 %765  ;;  %v568_v17 = vmul.f32 %v563_v27, %v558_v18  ;;  %v569_v35 = vmul.f32 %v567_v0, %v558_v18  ;;  %v580_v42 = vmul.f32 %v575_v41, %v558_v18  ;;  %v581_v31 = vmul.f32 %v579_v47, %v558_v18 }
  0xbb   :  { %v594_v52 = vrot.slane %v489_v36, %v1665_v1  ;;  %v598_v14 = vrot.slane %v490_v32, %v1665_v1  ;;  %v606_v46 = vrot.slane %v489_v36, %v1667_v3  ;;  %v610_v51 = vrot.slane %v490_v32, %v1667_v3 }
  0xbc   :  { %v570_v10 = vadd.f32 %v568_v17, %v539_v28  ;;  %v571_v55 = vadd.f32 %v569_v35, %v540_v9  ;;  %v582_v56 = vadd.f32 %v580_v42, %v551_v7  ;;  %v583_v20 = vadd.f32 %v581_v31, %v552_v23 }
  0xbd   :  { %v599_v21 = vmul.f32 %v594_v52, %v589_v13  ;;  %v600_v5 = vmul.f32 %v598_v14, %v589_v13  ;;  %v611_v6 = vmul.f32 %v606_v46, %v589_v13  ;;  %v612_v22 = vmul.f32 %v610_v51, %v589_v13  ;;  %v740_v24 = vpop.permute.xlu0 %739 }
  0xbe   :  { %v742_v25 = vpop.permute.xlu1 %741  ;;  %v642_v18 = vmul.f32 %v637_v15, %v620_v12  ;;  %v643_v36 = vmul.f32 %v641_v11, %v620_v12  ;;  %v661_v28 = vmul.f32 %v656_v53, %v651_v16  ;;  %v662_v23 = vmul.f32 %v660_v60, %v651_v16 }
  0xbf   :  { %v601_v32 = vadd.f32 %v599_v21, %v570_v10  ;;  %v602_v13 = vadd.f32 %v600_v5, %v571_v55  ;;  %v613_v26 = vadd.f32 %v611_v6, %v582_v56  ;;  %v614_v27 = vadd.f32 %v612_v22, %v583_v20 }
  0xc0   :  { %v673_v15 = vmul.f32 %v668_v8, %v651_v16  ;;  %v674_v11 = vmul.f32 %v672_v61, %v651_v16  ;;  %v692_v53 = vmul.f32 %v687_v37, %v682_v19  ;;  %v693_v60 = vmul.f32 %v691_v29, %v682_v19 }
  0xc1   :  { %v632_v12 = vadd.f32 %v1860_v33, %v601_v32  ;;  %v633_v0 = vadd.f32 %v1865_v40, %v602_v13  ;;  %v644_v41 = vadd.f32 %v642_v18, %v613_v26  ;;  %v645_v47 = vadd.f32 %v643_v36, %v614_v27  ;;  %v797_v9 = vpop.permute.xlu0 %796 }
  0xc2   :  { %v1916_v8 = vpop.permute.xlu1 %827  ;;  %v704_v61 = vmul.f32 %v699_v39, %v682_v19  ;;  %v705_v37 = vmul.f32 %v703_v30, %v682_v19  ;;  %v723_v29 = vmul.f32 %v718_v63, %v713_v48  ;;  %v724_v33 = vmul.f32 %v722_v49, %v713_v48  ;;  %v1933_v39 = vld [vmem:[%s2162_s3 + $0xc] sm:$0x3] }
  0xc3   :  { %v663_v40 = vadd.f32 %v661_v28, %v632_v12  ;;  %v664_v16 = vadd.f32 %v662_v23, %v633_v0  ;;  %v675_v7 = vadd.f32 %v673_v15, %v644_v41  ;;  %v676_v17 = vadd.f32 %v674_v11, %v645_v47 }
  0xc4   :  { %v735_v30 = vmul.f32 %v730_v38, %v713_v48  ;;  %v736_v63 = vmul.f32 %v734_v50, %v713_v48  ;;  %v744_v49 = vsel %vm743_vm4, %v740_v24, %v742_v25  ;;  %v745_v19 = vsel %vm743_vm4, %v742_v25, %v740_v24 }
  0xc5   :  { %v694_v35 = vadd.f32 %v692_v53, %v663_v40  ;;  %v695_v42 = vadd.f32 %v693_v60, %v664_v16  ;;  %v706_v31 = vadd.f32 %v704_v61, %v675_v7  ;;  %v707_v52 = vadd.f32 %v705_v37, %v676_v17  ;;  %v1945_v14 = vpop.permute.xlu0 %858 }
  0xc6   :  { %v1947_v46 = vpop.permute.xlu1 %911  ;;  %v1952_v38 = vmul.f32 %v2166_v2, %v744_v49  ;;  %v1957_v50 = vmul.f32 %v2167_v4, %v745_v19  ;;  %v898_v48 = vrot.slane %v1933_v39, %v1630_v44 }
  0xc7   :  { %v725_v51 = vadd.f32 %v723_v29, %v694_v35  ;;  %v726_v10 = vadd.f32 %v724_v33, %v695_v42  ;;  %v737_v55 = vadd.f32 %v735_v30, %v706_v31  ;;  %v738_v56 = vadd.f32 %v736_v63, %v707_v52 }
  0xc8   :  { %v771_v20 = vrot.slane %v1952_v38, %v1630_v44  ;;  %v775_v21 = vrot.slane %v1957_v50, %v1630_v44  ;;  %v783_v5 = vrot.slane %v1952_v38, %v1644_v54  ;;  %v787_v34 = vrot.slane %v1957_v50, %v1644_v54 }
  0xc9   :  { %v802_v6 = vrot.slane %v1952_v38, %v1632_v45  ;;  %v806_v22 = vrot.slane %v1957_v50, %v1632_v45  ;;  %v814_v24 = vrot.slane %v1952_v38, %v1651_v57  ;;  %v818_v25 = vrot.slane %v1957_v50, %v1651_v57  ;;  %v886_v18 = vpop.permute.xlu0 %885 }
  0xca   :  { %v888_v36 = vpop.permute.xlu1 %887  ;;  %v776_v28 = vmul.f32 %v771_v20, %v1883_v62  ;;  %v777_v23 = vmul.f32 %v775_v21, %v1883_v62  ;;  %v788_v32 = vmul.f32 %v783_v5, %v1883_v62  ;;  %v789_v13 = vmul.f32 %v787_v34, %v1883_v62 }
  0xcb   :  { %v807_v26 = vmul.f32 %v802_v6, %v797_v9  ;;  %v808_v27 = vmul.f32 %v806_v22, %v797_v9  ;;  %v819_v15 = vmul.f32 %v814_v24, %v797_v9  ;;  %v820_v11 = vmul.f32 %v818_v25, %v797_v9  ;;  %v1995_v9 = vld [vmem:[%s2162_s3 + $0xe] sm:$0x3] }
  0xcc   :  { %v778_v53 = vadd.f32 %v776_v28, %v725_v51  ;;  %v779_v60 = vadd.f32 %v777_v23, %v726_v10  ;;  %v790_v12 = vadd.f32 %v788_v32, %v737_v55  ;;  %v791_v0 = vadd.f32 %v789_v13, %v738_v56 }
  0xcd   :  { %v833_v41 = vrot.slane %v1952_v38, %v1653_v58  ;;  %v837_v47 = vrot.slane %v1957_v50, %v1653_v58  ;;  %v845_v61 = vrot.slane %v1952_v38, %v1655_v59  ;;  %v849_v62 = vrot.slane %v1957_v50, %v1655_v59  ;;  %v943_v37 = vpop.permute.xlu0 %942 }
  0xce   :  { %v1990_v29 = vpop.permute.xlu1 %973  ;;  %v809_v33 = vadd.f32 %v807_v26, %v778_v53  ;;  %v810_v40 = vadd.f32 %v808_v27, %v779_v60  ;;  %v821_v16 = vadd.f32 %v819_v15, %v790_v12  ;;  %v822_v7 = vadd.f32 %v820_v11, %v791_v0 }
  0xcf   :  { %v838_v17 = vmul.f32 %v833_v41, %v1916_v8  ;;  %v839_v30 = vmul.f32 %v837_v47, %v1916_v8  ;;  %v902_v63 = vrot.slane %v1933_v39, %v1632_v45  ;;  %v850_v49 = vmul.f32 %v845_v61, %v1916_v8 }
  0xd0   :  { %v851_v19 = vmul.f32 %v849_v62, %v1916_v8  ;;  %v1044_v35 = vrot.slane %v1995_v9, %v1630_v44  ;;  %v1048_v42 = vrot.slane %v1995_v9, %v1632_v45  ;;  %v864_v2 = vrot.slane %v1952_v38, %v1665_v1  ;;  %v2019_v8 = vld [vmem:[%s2162_s3 + $0x10] sm:$0x3] }
  0xd1   :  { %v840_v31 = vadd.f32 %v838_v17, %v809_v33  ;;  %v841_v52 = vadd.f32 %v839_v30, %v810_v40  ;;  %v868_v4 = vrot.slane %v1957_v50, %v1665_v1  ;;  %v2012_v51 = vpop.permute.xlu0 %1004  ;;  %v852_v55 = vadd.f32 %v850_v49, %v821_v16 }
  0xd2   :  { %v2014_v10 = vpop.permute.xlu1 %1057  ;;  %v853_v56 = vadd.f32 %v851_v19, %v822_v7  ;;  %v876_v20 = vrot.slane %v1952_v38, %v1667_v3  ;;  %v880_v21 = vrot.slane %v1957_v50, %v1667_v3  ;;  %v869_v5 = vmul.f32 %v864_v2, %v1945_v14 }
  0xd3   :  { %v870_v34 = vmul.f32 %v868_v4, %v1945_v14  ;;  %v890_v6 = vsel %vm889_vm5, %v886_v18, %v888_v36  ;;  %v891_v22 = vsel %vm889_vm5, %v888_v36, %v886_v18  ;;  %v1190_v38 = vrot.slane %v2019_v8, %v1630_v44 }
  0xd4   :  { %v881_v24 = vmul.f32 %v876_v20, %v1945_v14  ;;  %v882_v25 = vmul.f32 %v880_v21, %v1945_v14  ;;  %v1194_v50 = vrot.slane %v2019_v8, %v1632_v45  ;;  %v871_v28 = vadd.f32 %v869_v5, %v840_v31 }
  0xd5   :  { %v872_v23 = vadd.f32 %v870_v34, %v841_v52  ;;  %v905_v32 = vmul.f32 %v898_v48, %v890_v6  ;;  %v906_v13 = vmul.f32 %v902_v63, %v891_v22  ;;  %v1032_v26 = vpop.permute.xlu0 %1031 }
  0xd6   :  { %v1034_v27 = vpop.permute.xlu1 %1033  ;;  %v883_v18 = vadd.f32 %v881_v24, %v852_v55  ;;  %v884_v36 = vadd.f32 %v882_v25, %v853_v56 }
  0xd7   :  { %v1036_v14 = vsel %vm1035_vm6, %v1032_v26, %v1034_v27  ;;  %v1037_v15 = vsel %vm1035_vm6, %v1034_v27, %v1032_v26  ;;  %v917_v11 = vrot.slane %v905_v32, %v1630_v44  ;;  %v921_v53 = vrot.slane %v906_v13, %v1630_v44 }
  0xd8   :  { %v929_v60 = vrot.slane %v905_v32, %v1644_v54  ;;  %v933_v39 = vrot.slane %v906_v13, %v1644_v54  ;;  %v948_v48 = vrot.slane %v905_v32, %v1632_v45  ;;  %v952_v12 = vrot.slane %v906_v13, %v1632_v45 }
  0xd9   :  { %v960_v0 = vrot.slane %v905_v32, %v1651_v57  ;;  %v964_v41 = vrot.slane %v906_v13, %v1651_v57  ;;  %v922_v47 = vmul.f32 %v917_v11, %v1947_v46  ;;  %v923_v61 = vmul.f32 %v921_v53, %v1947_v46  ;;  %v1089_v40 = vpop.permute.xlu0 %1088 }
  0xda   :  { %v934_v62 = vmul.f32 %v929_v60, %v1947_v46  ;;  %v935_v33 = vmul.f32 %v933_v39, %v1947_v46  ;;  %v2057_v16 = vpop.permute.xlu1 %1119  ;;  %v953_v7 = vmul.f32 %v948_v48, %v943_v37  ;;  %v954_v17 = vmul.f32 %v952_v12, %v943_v37 }
  0xdb   :  { %v965_v30 = vmul.f32 %v960_v0, %v943_v37  ;;  %v966_v63 = vmul.f32 %v964_v41, %v943_v37  ;;  %v924_v49 = vadd.f32 %v922_v47, %v871_v28  ;;  %v925_v19 = vadd.f32 %v923_v61, %v872_v23 }
  0xdc   :  { %v936_v31 = vadd.f32 %v934_v62, %v883_v18  ;;  %v937_v52 = vadd.f32 %v935_v33, %v884_v36  ;;  %v979_v2 = vrot.slane %v905_v32, %v1653_v58  ;;  %v983_v4 = vrot.slane %v906_v13, %v1653_v58 }
  0xdd   :  { %v991_v55 = vrot.slane %v905_v32, %v1655_v59  ;;  %v995_v56 = vrot.slane %v906_v13, %v1655_v59  ;;  %v955_v46 = vadd.f32 %v953_v7, %v924_v49  ;;  %v956_v20 = vadd.f32 %v954_v17, %v925_v19  ;;  %v2063_v34 = vpop.permute.xlu0 %1150 }
  0xde   :  { %v967_v21 = vadd.f32 %v965_v30, %v936_v31  ;;  %v968_v5 = vadd.f32 %v966_v63, %v937_v52  ;;  %v2065_v6 = vpop.permute.xlu1 %1203  ;;  %v984_v37 = vmul.f32 %v979_v2, %v1990_v29  ;;  %v985_v22 = vmul.f32 %v983_v4, %v1990_v29 }
  0xdf   :  { %v996_v24 = vmul.f32 %v991_v55, %v1990_v29  ;;  %v997_v25 = vmul.f32 %v995_v56, %v1990_v29  ;;  %v1010_v28 = vrot.slane %v905_v32, %v1665_v1  ;;  %v1014_v23 = vrot.slane %v906_v13, %v1665_v1 }
  0xe0   :  { %v1022_v26 = vrot.slane %v905_v32, %v1667_v3  ;;  %v1026_v27 = vrot.slane %v906_v13, %v1667_v3  ;;  %v986_v18 = vadd.f32 %v984_v37, %v955_v46  ;;  %v987_v36 = vadd.f32 %v985_v22, %v956_v20 }
  0xe1   :  { %v998_v11 = vadd.f32 %v996_v24, %v967_v21  ;;  %v999_v53 = vadd.f32 %v997_v25, %v968_v5  ;;  %v1015_v60 = vmul.f32 %v1010_v28, %v2012_v51  ;;  %v1016_v39 = vmul.f32 %v1014_v23, %v2012_v51  ;;  %v1178_v12 = vpop.permute.xlu0 %1177 }
  0xe2   :  { %v1027_v48 = vmul.f32 %v1022_v26, %v2012_v51  ;;  %v1028_v29 = vmul.f32 %v1026_v27, %v2012_v51  ;;  %v1180_v0 = vpop.permute.xlu1 %1179  ;;  %v1051_v32 = vmul.f32 %v1044_v35, %v1036_v14  ;;  %v1052_v13 = vmul.f32 %v1048_v42, %v1037_v15 }
  0xe3   :  { %v1182_v41 = vsel %vm1181_vm7, %v1178_v12, %v1180_v0  ;;  %v1183_v47 = vsel %vm1181_vm7, %v1180_v0, %v1178_v12  ;;  %v1017_v61 = vadd.f32 %v1015_v60, %v986_v18  ;;  %v1018_v62 = vadd.f32 %v1016_v39, %v987_v36 }
  0xe4   :  { %v1029_v33 = vadd.f32 %v1027_v48, %v998_v11  ;;  %v1030_v51 = vadd.f32 %v1028_v29, %v999_v53  ;;  %v1063_v7 = vrot.slane %v1051_v32, %v1630_v44  ;;  %v1067_v17 = vrot.slane %v1052_v13, %v1630_v44 }
  0xe5   :  { %v1075_v35 = vrot.slane %v1051_v32, %v1644_v54  ;;  %v1079_v14 = vrot.slane %v1052_v13, %v1644_v54  ;;  %v1094_v9 = vrot.slane %v1051_v32, %v1632_v45  ;;  %v1098_v42 = vrot.slane %v1052_v13, %v1632_v45 }
  0xe6   :  { %v1106_v15 = vrot.slane %v1051_v32, %v1651_v57  ;;  %v1110_v43 = vrot.slane %v1052_v13, %v1651_v57  ;;  %v1068_v30 = vmul.f32 %v1063_v7, %v2014_v10  ;;  %v1069_v63 = vmul.f32 %v1067_v17, %v2014_v10  ;;  %v1235_v17 = vpop.permute.xlu0 %1234 }
  0xe7   :  { %v1080_v49 = vmul.f32 %v1075_v35, %v2014_v10  ;;  %v1081_v19 = vmul.f32 %v1079_v14, %v2014_v10  ;;  %v1099_v31 = vmul.f32 %v1094_v9, %v1089_v40  ;;  %v1100_v52 = vmul.f32 %v1098_v42, %v1089_v40 }
  0xe8   :  { %v1111_v2 = vmul.f32 %v1106_v15, %v1089_v40  ;;  %v1112_v4 = vmul.f32 %v1110_v43, %v1089_v40  ;;  %v1070_v55 = vadd.f32 %v1068_v30, %v1017_v61  ;;  %v1071_v56 = vadd.f32 %v1069_v63, %v1018_v62 }
  0xe9   :  { %v1082_v46 = vadd.f32 %v1080_v49, %v1029_v33  ;;  %v1083_v20 = vadd.f32 %v1081_v19, %v1030_v51  ;;  %v1125_v21 = vrot.slane %v1051_v32, %v1653_v58  ;;  %v1129_v5 = vrot.slane %v1052_v13, %v1653_v58 }
  0xea   :  { %v1137_v37 = vrot.slane %v1051_v32, %v1655_v59  ;;  %v1141_v22 = vrot.slane %v1052_v13, %v1655_v59  ;;  %v1101_v24 = vadd.f32 %v1099_v31, %v1070_v55  ;;  %v1102_v25 = vadd.f32 %v1100_v52, %v1071_v56  ;;  %v1266_v52 = vpop.permute.xlu1 %1265 }
  0xeb   :  { %v1113_v28 = vadd.f32 %v1111_v2, %v1082_v46  ;;  %v1114_v10 = vadd.f32 %v1112_v4, %v1083_v20  ;;  %v1130_v23 = vmul.f32 %v1125_v21, %v2057_v16  ;;  %v1131_v40 = vmul.f32 %v1129_v5, %v2057_v16 }
  0xec   :  { %v1142_v26 = vmul.f32 %v1137_v37, %v2057_v16  ;;  %v1143_v27 = vmul.f32 %v1141_v22, %v2057_v16  ;;  %v1156_v18 = vrot.slane %v1051_v32, %v1665_v1  ;;  %v1160_v36 = vrot.slane %v1052_v13, %v1665_v1 }
  0xed   :  { %v1168_v11 = vrot.slane %v1051_v32, %v1667_v3  ;;  %v1172_v53 = vrot.slane %v1052_v13, %v1667_v3  ;;  %v1132_v60 = vadd.f32 %v1130_v23, %v1101_v24  ;;  %v1133_v39 = vadd.f32 %v1131_v40, %v1102_v25  ;;  %v1297_v24 = vpop.permute.xlu0 %1296 }
  0xee   :  { %v1144_v48 = vadd.f32 %v1142_v26, %v1113_v28  ;;  %v1145_v29 = vadd.f32 %v1143_v27, %v1114_v10  ;;  %v1161_v12 = vmul.f32 %v1156_v18, %v2063_v34  ;;  %v1162_v0 = vmul.f32 %v1160_v36, %v2063_v34 }
  0xef   :  { %v1173_v61 = vmul.f32 %v1168_v11, %v2063_v34  ;;  %v1174_v16 = vmul.f32 %v1172_v53, %v2063_v34  ;;  %v1197_v62 = vmul.f32 %v1190_v38, %v1182_v41  ;;  %v1198_v32 = vmul.f32 %v1194_v50, %v1183_v47 }
  0xf0   :  { %v1163_v13 = vadd.f32 %v1161_v12, %v1132_v60  ;;  %v1164_v33 = vadd.f32 %v1162_v0, %v1133_v39 }
  0xf1   :  { %v1175_v51 = vadd.f32 %v1173_v61, %v1144_v48  ;;  %v1176_v7 = vadd.f32 %v1174_v16, %v1145_v29  ;;  %v1209_v35 = vrot.slane %v1197_v62, %v1630_v44  ;;  %v1213_v14 = vrot.slane %v1198_v32, %v1630_v44  ;;  %v1353_v61 = vld [vmem:[%s2163_s5] sm:$0xf] }
  0xf2   :  { %v1221_v9 = vrot.slane %v1197_v62, %v1644_v54  ;;  %v1225_v34 = vrot.slane %v1198_v32, %v1644_v54  ;;  %v1240_v42 = vrot.slane %v1197_v62, %v1632_v45  ;;  %v1244_v38 = vrot.slane %v1198_v32, %v1632_v45 }
  0xf3   :  { %v1252_v8 = vrot.slane %v1197_v62, %v1651_v57  ;;  %v1256_v50 = vrot.slane %v1198_v32, %v1651_v57  ;;  %v1214_v41 = vmul.f32 %v1209_v35, %v2065_v6  ;;  %v1215_v47 = vmul.f32 %v1213_v14, %v2065_v6 }
  0xf4   :  { %v1226_v15 = vmul.f32 %v1221_v9, %v2065_v6  ;;  %v1227_v44 = vmul.f32 %v1225_v34, %v2065_v6  ;;  %v1245_v43 = vmul.f32 %v1240_v42, %v1235_v17  ;;  %v1246_v30 = vmul.f32 %v1244_v38, %v1235_v17 }
  0xf5   :  { %v1257_v63 = vmul.f32 %v1252_v8, %v1235_v17  ;;  %v1258_v54 = vmul.f32 %v1256_v50, %v1235_v17  ;;  %v1216_v49 = vadd.f32 %v1214_v41, %v1163_v13  ;;  %v1217_v19 = vadd.f32 %v1215_v47, %v1164_v33 }
  0xf6   :  { %v1228_v31 = vadd.f32 %v1226_v15, %v1175_v51  ;;  %v1229_v45 = vadd.f32 %v1227_v44, %v1176_v7  ;;  %v1271_v2 = vrot.slane %v1197_v62, %v1653_v58  ;;  %v1275_v57 = vrot.slane %v1198_v32, %v1653_v58  ;;  %v1349_v15 = vld [vmem:[%s2164_s4] sm:$0xf] }
  0xf7   :  { %v1283_v4 = vrot.slane %v1197_v62, %v1655_v59  ;;  %v1287_v55 = vrot.slane %v1198_v32, %v1655_v59  ;;  %v1247_v56 = vadd.f32 %v1245_v43, %v1216_v49  ;;  %v1248_v46 = vadd.f32 %v1246_v30, %v1217_v19 }
  0xf8   :  { %v1259_v6 = vadd.f32 %v1257_v63, %v1228_v31  ;;  %v1260_v20 = vadd.f32 %v1258_v54, %v1229_v45  ;;  %v1276_v21 = vmul.f32 %v1271_v2, %v1266_v52  ;;  %v1277_v5 = vmul.f32 %v1275_v57, %v1266_v52 }
  0xf9   :  { %v1288_v37 = vmul.f32 %v1283_v4, %v1266_v52  ;;  %v1289_v22 = vmul.f32 %v1287_v55, %v1266_v52  ;;  %v1302_v25 = vrot.slane %v1197_v62, %v1665_v1  ;;  %v1306_v28 = vrot.slane %v1198_v32, %v1665_v1 }
  0xfa   :  { %v1314_v10 = vrot.slane %v1197_v62, %v1667_v3  ;;  %v1318_v58 = vrot.slane %v1198_v32, %v1667_v3  ;;  %v1278_v23 = vadd.f32 %v1276_v21, %v1247_v56  ;;  %v1279_v40 = vadd.f32 %v1277_v5, %v1248_v46 }
  0xfb   :  { %v1290_v59 = vadd.f32 %v1288_v37, %v1259_v6  ;;  %v1291_v26 = vadd.f32 %v1289_v22, %v1260_v20  ;;  %v1307_v27 = vmul.f32 %v1302_v25, %v1297_v24  ;;  %v1308_v18 = vmul.f32 %v1306_v28, %v1297_v24 }
  0xfc   :  { %v1319_v36 = vmul.f32 %v1314_v10, %v1297_v24  ;;  %v1320_v11 = vmul.f32 %v1318_v58, %v1297_v24 }
  0xfd   :  { %v1309_v53 = vadd.f32 %v1307_v27, %v1278_v23  ;;  %v1310_v60 = vadd.f32 %v1308_v18, %v1279_v40 }
  0xfe   :  { %v1321_v39 = vadd.f32 %v1319_v36, %v1290_v59  ;;  %v1322_v48 = vadd.f32 %v1320_v11, %v1291_v26 }
 0x100   :  { %v1323_v29 = vadd.f32 %v1321_v39, %v1309_v53  ;;  %v1324_v12 = vadd.f32 %v1322_v48, %v1310_v60 }
 0x102   :  { %v1326_v1 = vsel %vm1325_vm8, %v1323_v29, 0.0  ;;  %v1327_v0 = vsel %vm1325_vm8, %v1324_v12, 0.0 }
 0x103   :  { %v1328_v3 = vadd.f32 %v1327_v0, %v1326_v1 }
 0x105   :  { %1329 = vadd.xlane.f32.xlu1 %v1328_v3 }
 0x116   :  { %1363 = vperm.xlu1 %1444, %v1353_v61  }
 0x192   :  { %v1330_v16 = vpop.xlane.xlu1 %1329 }
 0x193   :  { %v1332_v62 = vmul.f32 0.001953125, %v1330_v16 }
 0x195   :  { %v1333_v32 = vsub.f32 %v1309_v53, %v1332_v62  ;;  %v1334_v13 = vsub.f32 %v1310_v60, %v1332_v62  ;;  %v1335_v33 = vsub.f32 %v1321_v39, %v1332_v62  ;;  %v1336_v51 = vsub.f32 %v1322_v48, %v1332_v62 }
 0x196   :  { %v1364_v31 = vpop.permute.xlu1 %1363 }
 0x197   :  { %v1337_v7 = vmul.f32 %v1333_v32, %v1333_v32  ;;  %v1338_v17 = vmul.f32 %v1334_v13, %v1334_v13  ;;  %v1339_v35 = vmul.f32 %v1335_v33, %v1335_v33  ;;  %v1340_v14 = vmul.f32 %v1336_v51, %v1336_v51 }
 0x199   :  { %v1341_v9 = vadd.f32 %v1339_v35, %v1337_v7  ;;  %v1342_v34 = vadd.f32 %v1340_v14, %v1338_v17 }
 0x19b   :  { %v1343_v42 = vsel %vm1325_vm8, %v1341_v9, 0.0  ;;  %v1344_v38 = vsel %vm1325_vm8, %v1342_v34, 0.0 }
 0x19c   :  { %v1345_v8 = vadd.f32 %v1344_v38, %v1343_v42 }
 0x19e   :  { %1346 = vadd.xlane.f32.xlu0 %v1345_v8 }
 0x22b   :  { %v1347_v50 = vpop.xlane.xlu0 %1346 }
 0x22c   :  { %v1348_v41 = vmul.f32 0.001953125, %v1347_v50 }
 0x22e   :  { %v1350_v47 = vadd.f32 1e-05, %v1348_v41 }
 0x230   :  { %1445 = vrsqrt.f32 %v1350_v47 }
 0x23a   :  { %v1446_v44 = vpop.eup %1445 }
 0x23b   :  { %v1352_v43 = vmul.f32 %v1446_v44, %v1349_v15 }
 0x23d   :  { %1356 = vperm.xlu0 %1443, %v1352_v43  }
 0x2bc   :  { %v1357_v30 = vpop.permute.xlu0 %1356 }
 0x2bd   :  { %v1359_v63 = vmul.f32 %v1357_v30, %v1333_v32  ;;  %v1360_v54 = vmul.f32 %v1357_v30, %v1334_v13  ;;  %v1375_v49 = vmul.f32 %v1357_v30, %v1335_v33  ;;  %v1376_v19 = vmul.f32 %v1357_v30, %v1336_v51 }
 0x2bf   :  { %v1366_v45 = vadd.f32 %v1364_v31, %v1359_v63  ;;  %v1367_v52 = vadd.f32 %v1364_v31, %v1360_v54  ;;  %v1377_v2 = vadd.f32 %v1375_v49, %v1364_v31  ;;  %v1378_v57 = vadd.f32 %v1376_v19, %v1364_v31 }
 0x2c1   :  { %v1368_v4 = vmax.f32 %v1366_v45, 0.0  ;;  %v1369_v55 = vmax.f32 %v1367_v52, 0.0  ;;  %v1379_v56 = vmax.f32 %v1377_v2, 0.0  ;;  %v1380_v46 = vmax.f32 %v1378_v57, 0.0 }
 0x2c3   :  { %v1372_v6 = vcombine.low %v1368_v4, %v1369_v55  ;;  %v1383_v20 = vcombine.low %v1379_v56, %v1380_v46 }
 0x2c5   :  { %1374 = vst [vmem:[%s2165_s6] sm:$0xff] %v1372_v6  ;;  %1433 = vst [vmem:[%s2165_s6 + $0x8] sm:$0xff] %v1383_v20 }

</bundles_post_ra>
